<compile_context>
chip_gen: v5e
topology: v5e:2x2
jax: 0.10.0
libtpu: 0.0.40
codegen_flags: <defaults>
</compile_context>

<pallas_src>
import math
from functools import partial

import jax
import jax.numpy as jnp
from jax.experimental import pallas as pl
from jax.experimental.pallas import tpu as pltpu


def _layer_norm(x, w, b, eps=1e-5):
    mean = jnp.mean(x, axis=-1, keepdims=True)
    var = jnp.mean((x - mean) ** 2, axis=-1, keepdims=True)
    return (x - mean) * jax.lax.rsqrt(var + eps) * w + b


def _encoder_kernel(nheads, head_dim, bt, seq,
                    xemb_ref, maskb_ref,
                    in_w_ref, in_b_ref, op_w_ref, op_b_ref,
                    l1_w_ref, l1_b_ref, l2_w_ref, l2_b_ref,
                    n1_w_ref, n1_b_ref, n2_w_ref, n2_b_ref,
                    out_ref, x_s):
    """One grid step = (batch block of Bt elements, encoder layer l)."""
    l = pl.program_id(1)
    D = nheads * head_dim
    M = bt * seq

    # Initialize the residual-stream scratch with the embeddings at layer 0.
    @pl.when(l == 0)
    def _():
        x_s[...] = xemb_ref[...].reshape(M, D)

    x = x_s[...]                                                     # (M, D)

    # ---- multi-head self-attention (PyTorch MultiheadAttention semantics) ----
    # Weights are pre-transposed: (D, 3D). One big M=Bt*S matmul on the MXU.
    qkv = jnp.dot(x, in_w_ref[0], preferred_element_type=jnp.float32) + in_b_ref[0]
    q = qkv[:, :D].reshape(bt, seq, D)
    k = qkv[:, D:2 * D].reshape(bt, seq, D)
    v = qkv[:, 2 * D:].reshape(bt, seq, D)
    bias = maskb_ref[...]                       # (Bt, 1, S) additive key-padding bias
    scale = 1.0 / math.sqrt(head_dim)

    head_outs = []
    for h in range(nheads):                     # static head loop; batched over Bt
        sl = slice(h * head_dim, (h + 1) * head_dim)
        qh = q[:, :, sl] * scale                # (Bt, S, hd)
        kh = k[:, :, sl]
        vh = v[:, :, sl]
        s = jnp.einsum("bqd,bkd->bqk", qh, kh,
                       preferred_element_type=jnp.float32) + bias    # (Bt, S, S)
        s = s - jnp.max(s, axis=-1, keepdims=True)
        p = jnp.exp(s)
        # softmax denominator on the EUP (free slot) instead of a VALU divide
        p = p * pl.reciprocal(jnp.sum(p, axis=-1, keepdims=True), approx=True)
        head_outs.append(jnp.einsum("bqk,bkd->bqd", p, vh,
                                    preferred_element_type=jnp.float32))
    attn = jnp.concatenate(head_outs, axis=-1).reshape(M, D)         # (M, D)
    attn = jnp.dot(attn, op_w_ref[0], preferred_element_type=jnp.float32) + op_b_ref[0]

    # residual + LayerNorm1 (dropout1 == identity in eval)
    x = _layer_norm(x + attn, n1_w_ref[0], n1_b_ref[0])

    # ---- feed-forward block (ReLU activation, dropout == identity) ----
    h1 = jnp.maximum(
        jnp.dot(x, l1_w_ref[0], preferred_element_type=jnp.float32) + l1_b_ref[0],
        0.0)
    ff = jnp.dot(h1, l2_w_ref[0], preferred_element_type=jnp.float32) + l2_b_ref[0]
    x = _layer_norm(x + ff, n2_w_ref[0], n2_b_ref[0])
    x_s[...] = x

    # ---- emit (encoding + src_embeddings) after the last layer ----
    @pl.when(l == pl.num_programs(1) - 1)
    def _():
        out_ref[...] = (x + xemb_ref[...].reshape(M, D)).reshape(
            bt, seq, D).astype(out_ref.dtype)


def _out_proj_kernel(x_ref, w_ref, b_ref, o_ref):
    """Lane-dense tiled output projection: o = x @ Wout_t + b."""
    o_ref[...] = (jnp.dot(x_ref[...], w_ref[...],
                          preferred_element_type=jnp.float32)
                  + b_ref[...]).astype(o_ref.dtype)


def _pick_batch_block(B, S):
    """Largest divisor of B with Bt*S <= 256 that leaves >=2 batch blocks (v7x 2-TC)."""
    divisors = [d for d in range(1, B + 1) if B % d == 0]
    cands = [d for d in divisors if B // d >= 2 and d * S <= 256]
    if not cands:
        cands = [d for d in divisors if d * S <= 256] or [1]
    return max(cands)


def transformer_model_v2_forward(params, input_ids, attention_mask, labels=None):
    del labels  # unused by the PyTorch forward as well
    emb = params["embedding"]                  # (V, D)
    pos = params["pos"]                        # (1, MAX_SEQ, D)
    B, S = input_ids.shape
    D = emb.shape[1]
    H = int(params["nheads"])
    L = params["in_w"].shape[0]
    DFF = params["l1_w"].shape[2]
    V = params["wout_t"].shape[1]

    # glue: embedding lookup + positional encoding, key-padding bias
    x_emb = (jnp.take(emb, input_ids, axis=0) + pos[:, :S, :]).astype(jnp.float32)
    mask_bias = jnp.where(attention_mask.astype(bool), 0.0, -1e30)
    mask_bias = mask_bias.astype(jnp.float32).reshape(B, 1, S)

    Bt = _pick_batch_block(B, S)
    kernel = partial(_encoder_kernel, H, D // H, Bt, S)

    # size the scoped VMEM explicitly: ~2x double-buffered blocks + scratch
    blk_elems = (2 * Bt * S * D + Bt * S
                 + D * 3 * D + 3 * D + D * D + D
                 + D * DFF + DFF + DFF * D + D + 4 * D)
    vmem_needed = 4 * (2 * blk_elems + Bt * S * D)
    vmem_limit = int(min(max(2 * vmem_needed, 32 * 1024 * 1024), 96 * 1024 * 1024))

    enc_sum = pl.pallas_call(
        kernel,
        out_shape=jax.ShapeDtypeStruct((B, S, D), jnp.float32),
        grid_spec=pltpu.PrefetchScalarGridSpec(
            num_scalar_prefetch=0,
            grid=(B // Bt, L),
            in_specs=[
                pl.BlockSpec((Bt, S, D), lambda b, l: (b, 0, 0)),       # x_emb
                pl.BlockSpec((Bt, 1, S), lambda b, l: (b, 0, 0)),       # mask bias
                pl.BlockSpec((1, D, 3 * D), lambda b, l: (l, 0, 0)),    # in_proj W^T
                pl.BlockSpec((1, 1, 3 * D), lambda b, l: (l, 0, 0)),    # in_proj b
                pl.BlockSpec((1, D, D), lambda b, l: (l, 0, 0)),        # out_proj W^T
                pl.BlockSpec((1, 1, D), lambda b, l: (l, 0, 0)),        # out_proj b
                pl.BlockSpec((1, D, DFF), lambda b, l: (l, 0, 0)),      # linear1 W^T
                pl.BlockSpec((1, 1, DFF), lambda b, l: (l, 0, 0)),      # linear1 b
                pl.BlockSpec((1, DFF, D), lambda b, l: (l, 0, 0)),      # linear2 W^T
                pl.BlockSpec((1, 1, D), lambda b, l: (l, 0, 0)),        # linear2 b
                pl.BlockSpec((1, 1, D), lambda b, l: (l, 0, 0)),        # norm1 w
                pl.BlockSpec((1, 1, D), lambda b, l: (l, 0, 0)),        # norm1 b
                pl.BlockSpec((1, 1, D), lambda b, l: (l, 0, 0)),        # norm2 w
                pl.BlockSpec((1, 1, D), lambda b, l: (l, 0, 0)),        # norm2 b
            ],
            out_specs=pl.BlockSpec((Bt, S, D), lambda b, l: (b, 0, 0)),
            scratch_shapes=[pltpu.VMEM((Bt * S, D), jnp.float32)],
        ),
        compiler_params=pltpu.CompilerParams(
            dimension_semantics=("parallel", "arbitrary"),
            vmem_limit_bytes=vmem_limit),
    )(x_emb, mask_bias,
      params["in_w"], params["in_b"], params["op_w"], params["op_b"],
      params["l1_w"], params["l1_b"], params["l2_w"], params["l2_b"],
      params["n1_w"], params["n1_b"], params["n2_w"], params["n2_b"])

    # ---- final logits = (encoding + src_embeddings) @ Wout^T + bout ----
    # vocab-tiled matmul: the (D, V) weight is streamed in (D, TV) tiles and the
    # output tiles are lane-dense (TM, TV).
    M = B * S
    xf = enc_sum.reshape(M, D)
    TM = 128 if M % 128 == 0 else M
    if V % 512 == 0:
        TV = 512
    elif V % 128 == 0:
        TV = 128
    else:
        TV = V

    logits = pl.pallas_call(
        _out_proj_kernel,
        out_shape=jax.ShapeDtypeStruct((M, V), jnp.float32),
        grid_spec=pltpu.PrefetchScalarGridSpec(
            num_scalar_prefetch=0,
            grid=(M // TM, V // TV),
            in_specs=[
                pl.BlockSpec((TM, D), lambda i, j: (i, 0)),             # x
                pl.BlockSpec((D, TV), lambda i, j: (0, j)),             # Wout^T tile
                pl.BlockSpec((1, TV), lambda i, j: (0, j)),             # bout tile
            ],
            out_specs=pl.BlockSpec((TM, TV), lambda i, j: (i, j)),
        ),
        compiler_params=pltpu.CompilerParams(
            dimension_semantics=("parallel", "parallel")),
    )(xf, params["wout_t"], params["bout"])
    return logits.reshape(B, S, V)


def init_params(key, vocab_size, pad_token_id, max_seq_len,
                d_model, nheads, nlayers, d_ff):
    """Weights are stored pre-transposed ((in, out) layout) for x @ W kernels."""
    ks = jax.random.split(key, 11)

    def nrm(k, shape, scale=0.02):
        return (scale * jax.random.normal(k, shape)).astype(jnp.float32)

    emb = nrm(ks[0], (vocab_size, d_model))
    emb = emb.at[pad_token_id].set(0.0)          # padding_idx row is zeroed
    pos = jnp.ones((1, max_seq_len, d_model), jnp.float32)  # torch.ones init

    return dict(
        embedding=emb,
        pos=pos,
        nheads=nheads,
        in_w=nrm(ks[1], (nlayers, d_model, 3 * d_model)),
        in_b=nrm(ks[2], (nlayers, 1, 3 * d_model)),
        op_w=nrm(ks[3], (nlayers, d_model, d_model)),
        op_b=nrm(ks[4], (nlayers, 1, d_model)),
        l1_w=nrm(ks[5], (nlayers, d_model, d_ff)),
        l1_b=nrm(ks[6], (nlayers, 1, d_ff)),
        l2_w=nrm(ks[7], (nlayers, d_ff, d_model)),
        l2_b=nrm(ks[8], (nlayers, 1, d_model)),
        n1_w=jnp.ones((nlayers, 1, d_model), jnp.float32),
        n1_b=jnp.zeros((nlayers, 1, d_model), jnp.float32),
        n2_w=jnp.ones((nlayers, 1, d_model), jnp.float32),
        n2_b=jnp.zeros((nlayers, 1, d_model), jnp.float32),
        wout_t=nrm(ks[9], (d_model, vocab_size)),
        bout=nrm(ks[10], (1, vocab_size)),
    )


if __name__ == "__main__":
    # small, lane-friendly shapes consistent with the module
    # (d_model scaled down to 128; d_ff = 2*d_model)
    VOCAB, PAD = 256, 0
    B, S, MAX_SEQ = 4, 8, 16
    D, H, L, DFF = 128, 4, 2, 256

    key = jax.random.PRNGKey(0)
    pkey, ikey = jax.random.split(key)
    params = init_params(pkey, VOCAB, PAD, MAX_SEQ, D, H, L, DFF)

    input_ids = jax.random.randint(ikey, (B, S), 1, VOCAB).astype(jnp.int32)
    attention_mask = jnp.array(
        [[1] * S,
         [1] * (S - 3) + [0] * 3,
         [1] * (S - 1) + [0] * 1,
         [1] * (S - 5) + [0] * 5], dtype=jnp.int32)
    input_ids = jnp.where(attention_mask == 1, input_ids, PAD)
    labels = input_ids  # unused by the forward pass

    logits = transformer_model_v2_forward(params, input_ids, attention_mask, labels)
    jax.block_until_ready(logits)
    assert logits.shape == (B, S, VOCAB) and logits.dtype == jnp.float32
    print("KERNEL_OK")
</pallas_src>

<mosaic_0001>
module attributes {stable_mosaic.version = 11 : i64} {
  func.func @_encoder_kernel(%arg0: i32, %arg1: i32, %arg2: memref<2x8x128xf32, #tpu.memory_space<vmem>>, %arg3: memref<2x1x8xf32, #tpu.memory_space<vmem>>, %arg4: memref<1x128x384xf32, #tpu.memory_space<vmem>>, %arg5: memref<1x1x384xf32, #tpu.memory_space<vmem>>, %arg6: memref<1x128x128xf32, #tpu.memory_space<vmem>>, %arg7: memref<1x1x128xf32, #tpu.memory_space<vmem>>, %arg8: memref<1x128x256xf32, #tpu.memory_space<vmem>>, %arg9: memref<1x1x256xf32, #tpu.memory_space<vmem>>, %arg10: memref<1x256x128xf32, #tpu.memory_space<vmem>>, %arg11: memref<1x1x128xf32, #tpu.memory_space<vmem>>, %arg12: memref<1x1x128xf32, #tpu.memory_space<vmem>>, %arg13: memref<1x1x128xf32, #tpu.memory_space<vmem>>, %arg14: memref<1x1x128xf32, #tpu.memory_space<vmem>>, %arg15: memref<1x1x128xf32, #tpu.memory_space<vmem>>, %arg16: memref<2x8x128xf32, #tpu.memory_space<vmem>>, %arg17: memref<16x128xf32, #tpu.memory_space<vmem>>) attributes {dimension_semantics = [#tpu.dimension_semantics<parallel>, #tpu.dimension_semantics<arbitrary>], iteration_bounds = array<i64: 2, 2>, scalar_prefetch = 0 : i64, scratch_operands = 1 : i64, tpu.core_type = #tpu.core_type<tc>, window_params = [{transform_indices = @transform_0, window_bounds = array<i64: 2, 8, 128>}, {transform_indices = @transform_1, window_bounds = array<i64: 2, 1, 8>}, {transform_indices = @transform_2, window_bounds = array<i64: 1, 128, 384>}, {transform_indices = @transform_3, window_bounds = array<i64: 1, 1, 384>}, {transform_indices = @transform_4, window_bounds = array<i64: 1, 128, 128>}, {transform_indices = @transform_5, window_bounds = array<i64: 1, 1, 128>}, {transform_indices = @transform_6, window_bounds = array<i64: 1, 128, 256>}, {transform_indices = @transform_7, window_bounds = array<i64: 1, 1, 256>}, {transform_indices = @transform_8, window_bounds = array<i64: 1, 256, 128>}, {transform_indices = @transform_9, window_bounds = array<i64: 1, 1, 128>}, {transform_indices = @transform_10, window_bounds = array<i64: 1, 1, 128>}, {transform_indices = @transform_11, window_bounds = array<i64: 1, 1, 128>}, {transform_indices = @transform_12, window_bounds = array<i64: 1, 1, 128>}, {transform_indices = @transform_13, window_bounds = array<i64: 1, 1, 128>}, {transform_indices = @transform_14, window_bounds = array<i64: 2, 8, 128>}]} {
    %c0_i32 = arith.constant 0 : i32
    %0 = arith.cmpi eq, %arg1, %c0_i32 : i32
    %1 = arith.extui %0 : i1 to i32
    %c0_i32_0 = arith.constant 0 : i32
    %2 = arith.cmpi ne, %1, %c0_i32_0 : i32
    scf.if %2 {
      %c0_78 = arith.constant 0 : index
      %c0_79 = arith.constant 0 : index
      %c0_80 = arith.constant 0 : index
      %177 = vector.load %arg2[%c0_78, %c0_79, %c0_80] : memref<2x8x128xf32, #tpu.memory_space<vmem>>, vector<2x8x128xf32>
      %178 = vector.shape_cast %177 : vector<2x8x128xf32> to vector<16x128xf32>
      %c0_81 = arith.constant 0 : index
      %c0_82 = arith.constant 0 : index
      %179 = vector.load %arg17[%c0_81, %c0_82] : memref<16x128xf32, #tpu.memory_space<vmem>>, vector<16x128xf32>
      tpu.vector_store %arg17[%c0_81, %c0_82], %178 {strides = array<i32>} : memref<16x128xf32, #tpu.memory_space<vmem>>, vector<16x128xf32>,
    } else {
    }
    %c0 = arith.constant 0 : index
    %c0_1 = arith.constant 0 : index
    %3 = vector.load %arg17[%c0, %c0_1] : memref<16x128xf32, #tpu.memory_space<vmem>>, vector<16x128xf32>
    %c0_2 = arith.constant 0 : index
    %c0_3 = arith.constant 0 : index
    %c0_4 = arith.constant 0 : index
    %4 = vector.load %arg4[%c0_2, %c0_3, %c0_4] : memref<1x128x384xf32, #tpu.memory_space<vmem>>, vector<1x128x384xf32>
    %5 = vector.shape_cast %4 : vector<1x128x384xf32> to vector<128x384xf32>
    %cst = arith.constant dense<0.000000e+00> : vector<16x384xf32>
    %6 = tpu.matmul %3, %5, %cst {dimension_numbers = #tpu.dot_dimension_numbers<[1], [0], [0], [1], [0, 0, 1, 1], [], []>} : vector<16x128xf32>, vector<128x384xf32>, vector<16x384xf32> -> vector<16x384xf32>
    %c0_5 = arith.constant 0 : index
    %c0_6 = arith.constant 0 : index
    %c0_7 = arith.constant 0 : index
    %7 = vector.load %arg5[%c0_5, %c0_6, %c0_7] : memref<1x1x384xf32, #tpu.memory_space<vmem>>, vector<1x1x384xf32>
    %8 = vector.shape_cast %7 : vector<1x1x384xf32> to vector<1x384xf32>
    %9 = vector.broadcast %8 : vector<1x384xf32> to vector<16x384xf32>
    %10 = arith.addf %6, %9 : vector<16x384xf32>
    %11 = vector.extract_strided_slice %10 {offsets = [0, 0], sizes = [16, 128], strides = [1, 1]} : vector<16x384xf32> to vector<16x128xf32>
    %12 = vector.shape_cast %11 : vector<16x128xf32> to vector<2x8x128xf32>
    %13 = vector.extract_strided_slice %10 {offsets = [0, 128], sizes = [16, 128], strides = [1, 1]} : vector<16x384xf32> to vector<16x128xf32>
    %14 = vector.shape_cast %13 : vector<16x128xf32> to vector<2x8x128xf32>
    %15 = vector.extract_strided_slice %10 {offsets = [0, 256], sizes = [16, 128], strides = [1, 1]} : vector<16x384xf32> to vector<16x128xf32>
    %16 = vector.shape_cast %15 : vector<16x128xf32> to vector<2x8x128xf32>
    %c0_8 = arith.constant 0 : index
    %c0_9 = arith.constant 0 : index
    %c0_10 = arith.constant 0 : index
    %17 = vector.load %arg3[%c0_8, %c0_9, %c0_10] : memref<2x1x8xf32, #tpu.memory_space<vmem>>, vector<2x1x8xf32>
    %18 = vector.extract_strided_slice %12 {offsets = [0, 0, 0], sizes = [2, 8, 32], strides = [1, 1, 1]} : vector<2x8x128xf32> to vector<2x8x32xf32>
    %cst_11 = arith.constant 0.176776692 : f32
    %19 = vector.broadcast %cst_11 : f32 to vector<2x8x32xf32>
    %20 = arith.mulf %18, %19 : vector<2x8x32xf32>
    %21 = vector.extract_strided_slice %14 {offsets = [0, 0, 0], sizes = [2, 8, 32], strides = [1, 1, 1]} : vector<2x8x128xf32> to vector<2x8x32xf32>
    %22 = vector.extract_strided_slice %16 {offsets = [0, 0, 0], sizes = [2, 8, 32], strides = [1, 1, 1]} : vector<2x8x128xf32> to vector<2x8x32xf32>
    "tpu.trace_start"() <{level = 10 : i32, message = "bqd,bkd->bqk"}> : () -> ()
    %cst_12 = arith.constant dense<0.000000e+00> : vector<2x8x8xf32>
    %23 = tpu.matmul %20, %21, %cst_12 {dimension_numbers = #tpu.dot_dimension_numbers<[2], [2], [1], [1], [0, 0, 0, 1, 1, 1], [0], [0]>} : vector<2x8x32xf32>, vector<2x8x32xf32>, vector<2x8x8xf32> -> vector<2x8x8xf32>
    "tpu.trace_stop"() : () -> ()
    %24 = vector.broadcast %17 : vector<2x1x8xf32> to vector<2x8x8xf32>
    %25 = arith.addf %23, %24 : vector<2x8x8xf32>
    %cst_13 = arith.constant dense<0xFF800000> : vector<2x8xf32>
    %26 = vector.multi_reduction <maximumf>, %25, %cst_13 [2] : vector<2x8x8xf32> to vector<2x8xf32>
    %27 = vector.shape_cast %26 : vector<2x8xf32> to vector<2x8x1xf32>
    %28 = vector.broadcast %27 : vector<2x8x1xf32> to vector<2x8x8xf32>
    %29 = arith.subf %25, %28 : vector<2x8x8xf32>
    %30 = math.exp %29 : vector<2x8x8xf32>
    %cst_14 = arith.constant dense<0.000000e+00> : vector<2x8xf32>
    %31 = vector.multi_reduction <add>, %30, %cst_14 [2] : vector<2x8x8xf32> to vector<2x8xf32>
    %32 = vector.shape_cast %31 : vector<2x8xf32> to vector<2x8x1xf32>
    %33 = tpu.reciprocal %32 {approx = true} : vector<2x8x1xf32> -> vector<2x8x1xf32>
    %34 = vector.broadcast %33 : vector<2x8x1xf32> to vector<2x8x8xf32>
    %35 = arith.mulf %30, %34 : vector<2x8x8xf32>
    "tpu.trace_start"() <{level = 10 : i32, message = "bqk,bkd->bqd"}> : () -> ()
    %cst_15 = arith.constant dense<0.000000e+00> : vector<2x8x32xf32>
    %36 = tpu.matmul %35, %22, %cst_15 {dimension_numbers = #tpu.dot_dimension_numbers<[2], [1], [1], [2], [0, 0, 0, 1, 1, 2], [0], [0]>} : vector<2x8x8xf32>, vector<2x8x32xf32>, vector<2x8x32xf32> -> vector<2x8x32xf32>
    "tpu.trace_stop"() : () -> ()
    %37 = vector.extract_strided_slice %12 {offsets = [0, 0, 32], sizes = [2, 8, 32], strides = [1, 1, 1]} : vector<2x8x128xf32> to vector<2x8x32xf32>
    %cst_16 = arith.constant 0.176776692 : f32
    %38 = vector.broadcast %cst_16 : f32 to vector<2x8x32xf32>
    %39 = arith.mulf %37, %38 : vector<2x8x32xf32>
    %40 = vector.extract_strided_slice %14 {offsets = [0, 0, 32], sizes = [2, 8, 32], strides = [1, 1, 1]} : vector<2x8x128xf32> to vector<2x8x32xf32>
    %41 = vector.extract_strided_slice %16 {offsets = [0, 0, 32], sizes = [2, 8, 32], strides = [1, 1, 1]} : vector<2x8x128xf32> to vector<2x8x32xf32>
    "tpu.trace_start"() <{level = 10 : i32, message = "bqd,bkd->bqk"}> : () -> ()
    %cst_17 = arith.constant dense<0.000000e+00> : vector<2x8x8xf32>
    %42 = tpu.matmul %39, %40, %cst_17 {dimension_numbers = #tpu.dot_dimension_numbers<[2], [2], [1], [1], [0, 0, 0, 1, 1, 1], [0], [0]>} : vector<2x8x32xf32>, vector<2x8x32xf32>, vector<2x8x8xf32> -> vector<2x8x8xf32>
    "tpu.trace_stop"() : () -> ()
    %43 = vector.broadcast %17 : vector<2x1x8xf32> to vector<2x8x8xf32>
    %44 = arith.addf %42, %43 : vector<2x8x8xf32>
    %cst_18 = arith.constant dense<0xFF800000> : vector<2x8xf32>
    %45 = vector.multi_reduction <maximumf>, %44, %cst_18 [2] : vector<2x8x8xf32> to vector<2x8xf32>
    %46 = vector.shape_cast %45 : vector<2x8xf32> to vector<2x8x1xf32>
    %47 = vector.broadcast %46 : vector<2x8x1xf32> to vector<2x8x8xf32>
    %48 = arith.subf %44, %47 : vector<2x8x8xf32>
    %49 = math.exp %48 : vector<2x8x8xf32>
    %cst_19 = arith.constant dense<0.000000e+00> : vector<2x8xf32>
    %50 = vector.multi_reduction <add>, %49, %cst_19 [2] : vector<2x8x8xf32> to vector<2x8xf32>
    %51 = vector.shape_cast %50 : vector<2x8xf32> to vector<2x8x1xf32>
    %52 = tpu.reciprocal %51 {approx = true} : vector<2x8x1xf32> -> vector<2x8x1xf32>
    %53 = vector.broadcast %52 : vector<2x8x1xf32> to vector<2x8x8xf32>
    %54 = arith.mulf %49, %53 : vector<2x8x8xf32>
    "tpu.trace_start"() <{level = 10 : i32, message = "bqk,bkd->bqd"}> : () -> ()
    %cst_20 = arith.constant dense<0.000000e+00> : vector<2x8x32xf32>
    %55 = tpu.matmul %54, %41, %cst_20 {dimension_numbers = #tpu.dot_dimension_numbers<[2], [1], [1], [2], [0, 0, 0, 1, 1, 2], [0], [0]>} : vector<2x8x8xf32>, vector<2x8x32xf32>, vector<2x8x32xf32> -> vector<2x8x32xf32>
    "tpu.trace_stop"() : () -> ()
    %56 = vector.extract_strided_slice %12 {offsets = [0, 0, 64], sizes = [2, 8, 32], strides = [1, 1, 1]} : vector<2x8x128xf32> to vector<2x8x32xf32>
    %cst_21 = arith.constant 0.176776692 : f32
    %57 = vector.broadcast %cst_21 : f32 to vector<2x8x32xf32>
    %58 = arith.mulf %56, %57 : vector<2x8x32xf32>
    %59 = vector.extract_strided_slice %14 {offsets = [0, 0, 64], sizes = [2, 8, 32], strides = [1, 1, 1]} : vector<2x8x128xf32> to vector<2x8x32xf32>
    %60 = vector.extract_strided_slice %16 {offsets = [0, 0, 64], sizes = [2, 8, 32], strides = [1, 1, 1]} : vector<2x8x128xf32> to vector<2x8x32xf32>
    "tpu.trace_start"() <{level = 10 : i32, message = "bqd,bkd->bqk"}> : () -> ()
    %cst_22 = arith.constant dense<0.000000e+00> : vector<2x8x8xf32>
    %61 = tpu.matmul %58, %59, %cst_22 {dimension_numbers = #tpu.dot_dimension_numbers<[2], [2], [1], [1], [0, 0, 0, 1, 1, 1], [0], [0]>} : vector<2x8x32xf32>, vector<2x8x32xf32>, vector<2x8x8xf32> -> vector<2x8x8xf32>
    "tpu.trace_stop"() : () -> ()
    %62 = vector.broadcast %17 : vector<2x1x8xf32> to vector<2x8x8xf32>
    %63 = arith.addf %61, %62 : vector<2x8x8xf32>
    %cst_23 = arith.constant dense<0xFF800000> : vector<2x8xf32>
    %64 = vector.multi_reduction <maximumf>, %63, %cst_23 [2] : vector<2x8x8xf32> to vector<2x8xf32>
    %65 = vector.shape_cast %64 : vector<2x8xf32> to vector<2x8x1xf32>
    %66 = vector.broadcast %65 : vector<2x8x1xf32> to vector<2x8x8xf32>
    %67 = arith.subf %63, %66 : vector<2x8x8xf32>
    %68 = math.exp %67 : vector<2x8x8xf32>
    %cst_24 = arith.constant dense<0.000000e+00> : vector<2x8xf32>
    %69 = vector.multi_reduction <add>, %68, %cst_24 [2] : vector<2x8x8xf32> to vector<2x8xf32>
    %70 = vector.shape_cast %69 : vector<2x8xf32> to vector<2x8x1xf32>
    %71 = tpu.reciprocal %70 {approx = true} : vector<2x8x1xf32> -> vector<2x8x1xf32>
    %72 = vector.broadcast %71 : vector<2x8x1xf32> to vector<2x8x8xf32>
    %73 = arith.mulf %68, %72 : vector<2x8x8xf32>
    "tpu.trace_start"() <{level = 10 : i32, message = "bqk,bkd->bqd"}> : () -> ()
    %cst_25 = arith.constant dense<0.000000e+00> : vector<2x8x32xf32>
    %74 = tpu.matmul %73, %60, %cst_25 {dimension_numbers = #tpu.dot_dimension_numbers<[2], [1], [1], [2], [0, 0, 0, 1, 1, 2], [0], [0]>} : vector<2x8x8xf32>, vector<2x8x32xf32>, vector<2x8x32xf32> -> vector<2x8x32xf32>
    "tpu.trace_stop"() : () -> ()
    %75 = vector.extract_strided_slice %12 {offsets = [0, 0, 96], sizes = [2, 8, 32], strides = [1, 1, 1]} : vector<2x8x128xf32> to vector<2x8x32xf32>
    %cst_26 = arith.constant 0.176776692 : f32
    %76 = vector.broadcast %cst_26 : f32 to vector<2x8x32xf32>
    %77 = arith.mulf %75, %76 : vector<2x8x32xf32>
    %78 = vector.extract_strided_slice %14 {offsets = [0, 0, 96], sizes = [2, 8, 32], strides = [1, 1, 1]} : vector<2x8x128xf32> to vector<2x8x32xf32>
    %79 = vector.extract_strided_slice %16 {offsets = [0, 0, 96], sizes = [2, 8, 32], strides = [1, 1, 1]} : vector<2x8x128xf32> to vector<2x8x32xf32>
    "tpu.trace_start"() <{level = 10 : i32, message = "bqd,bkd->bqk"}> : () -> ()
    %cst_27 = arith.constant dense<0.000000e+00> : vector<2x8x8xf32>
    %80 = tpu.matmul %77, %78, %cst_27 {dimension_numbers = #tpu.dot_dimension_numbers<[2], [2], [1], [1], [0, 0, 0, 1, 1, 1], [0], [0]>} : vector<2x8x32xf32>, vector<2x8x32xf32>, vector<2x8x8xf32> -> vector<2x8x8xf32>
    "tpu.trace_stop"() : () -> ()
    %81 = vector.broadcast %17 : vector<2x1x8xf32> to vector<2x8x8xf32>
    %82 = arith.addf %80, %81 : vector<2x8x8xf32>
    %cst_28 = arith.constant dense<0xFF800000> : vector<2x8xf32>
    %83 = vector.multi_reduction <maximumf>, %82, %cst_28 [2] : vector<2x8x8xf32> to vector<2x8xf32>
    %84 = vector.shape_cast %83 : vector<2x8xf32> to vector<2x8x1xf32>
    %85 = vector.broadcast %84 : vector<2x8x1xf32> to vector<2x8x8xf32>
    %86 = arith.subf %82, %85 : vector<2x8x8xf32>
    %87 = math.exp %86 : vector<2x8x8xf32>
    %cst_29 = arith.constant dense<0.000000e+00> : vector<2x8xf32>
    %88 = vector.multi_reduction <add>, %87, %cst_29 [2] : vector<2x8x8xf32> to vector<2x8xf32>
    %89 = vector.shape_cast %88 : vector<2x8xf32> to vector<2x8x1xf32>
    %90 = tpu.reciprocal %89 {approx = true} : vector<2x8x1xf32> -> vector<2x8x1xf32>
    %91 = vector.broadcast %90 : vector<2x8x1xf32> to vector<2x8x8xf32>
    %92 = arith.mulf %87, %91 : vector<2x8x8xf32>
    "tpu.trace_start"() <{level = 10 : i32, message = "bqk,bkd->bqd"}> : () -> ()
    %cst_30 = arith.constant dense<0.000000e+00> : vector<2x8x32xf32>
    %93 = tpu.matmul %92, %79, %cst_30 {dimension_numbers = #tpu.dot_dimension_numbers<[2], [1], [1], [2], [0, 0, 0, 1, 1, 2], [0], [0]>} : vector<2x8x8xf32>, vector<2x8x32xf32>, vector<2x8x32xf32> -> vector<2x8x32xf32>
    "tpu.trace_stop"() : () -> ()
    %94 = tpu.concatenate %36, %55, %74, %93 in 2 : vector<2x8x32xf32>, vector<2x8x32xf32>, vector<2x8x32xf32>, vector<2x8x32xf32> -> vector<2x8x128xf32>
    %95 = vector.shape_cast %94 : vector<2x8x128xf32> to vector<16x128xf32>
    %c0_31 = arith.constant 0 : index
    %c0_32 = arith.constant 0 : index
    %c0_33 = arith.constant 0 : index
    %96 = vector.load %arg6[%c0_31, %c0_32, %c0_33] : memref<1x128x128xf32, #tpu.memory_space<vmem>>, vector<1x128x128xf32>
    %97 = vector.shape_cast %96 : vector<1x128x128xf32> to vector<128x128xf32>
    %cst_34 = arith.constant dense<0.000000e+00> : vector<16x128xf32>
    %98 = tpu.matmul %95, %97, %cst_34 {dimension_numbers = #tpu.dot_dimension_numbers<[1], [0], [0], [1], [0, 0, 1, 1], [], []>} : vector<16x128xf32>, vector<128x128xf32>, vector<16x128xf32> -> vector<16x128xf32>
    %c0_35 = arith.constant 0 : index
    %c0_36 = arith.constant 0 : index
    %c0_37 = arith.constant 0 : index
    %99 = vector.load %arg7[%c0_35, %c0_36, %c0_37] : memref<1x1x128xf32, #tpu.memory_space<vmem>>, vector<1x1x128xf32>
    %100 = vector.shape_cast %99 : vector<1x1x128xf32> to vector<1x128xf32>
    %101 = vector.broadcast %100 : vector<1x128xf32> to vector<16x128xf32>
    %102 = arith.addf %98, %101 : vector<16x128xf32>
    %103 = arith.addf %3, %102 : vector<16x128xf32>
    %c0_38 = arith.constant 0 : index
    %c0_39 = arith.constant 0 : index
    %c0_40 = arith.constant 0 : index
    %104 = vector.load %arg12[%c0_38, %c0_39, %c0_40] : memref<1x1x128xf32, #tpu.memory_space<vmem>>, vector<1x1x128xf32>
    %105 = vector.shape_cast %104 : vector<1x1x128xf32> to vector<1x128xf32>
    %c0_41 = arith.constant 0 : index
    %c0_42 = arith.constant 0 : index
    %c0_43 = arith.constant 0 : index
    %106 = vector.load %arg13[%c0_41, %c0_42, %c0_43] : memref<1x1x128xf32, #tpu.memory_space<vmem>>, vector<1x1x128xf32>
    %107 = vector.shape_cast %106 : vector<1x1x128xf32> to vector<1x128xf32>
    %cst_44 = arith.constant dense<0.000000e+00> : vector<16xf32>
    %108 = vector.multi_reduction <add>, %103, %cst_44 [1] : vector<16x128xf32> to vector<16xf32>
    %109 = vector.shape_cast %108 : vector<16xf32> to vector<16x1xf32>
    %cst_45 = arith.constant 1.280000e+02 : f32
    %110 = vector.broadcast %cst_45 : f32 to vector<16x1xf32>
    %111 = arith.divf %109, %110 : vector<16x1xf32>
    %112 = vector.broadcast %111 : vector<16x1xf32> to vector<16x128xf32>
    %113 = arith.subf %103, %112 : vector<16x128xf32>
    %114 = arith.mulf %113, %113 : vector<16x128xf32>
    %cst_46 = arith.constant dense<0.000000e+00> : vector<16xf32>
    %115 = vector.multi_reduction <add>, %114, %cst_46 [1] : vector<16x128xf32> to vector<16xf32>
    %116 = vector.shape_cast %115 : vector<16xf32> to vector<16x1xf32>
    %cst_47 = arith.constant 1.280000e+02 : f32
    %117 = vector.broadcast %cst_47 : f32 to vector<16x1xf32>
    %118 = arith.divf %116, %117 : vector<16x1xf32>
    %119 = vector.broadcast %111 : vector<16x1xf32> to vector<16x128xf32>
    %120 = arith.subf %103, %119 : vector<16x128xf32>
    %cst_48 = arith.constant 9.99999974E-6 : f32
    %121 = vector.broadcast %cst_48 : f32 to vector<16x1xf32>
    %122 = arith.addf %118, %121 : vector<16x1xf32>
    %123 = math.rsqrt %122 : vector<16x1xf32>
    %124 = vector.broadcast %123 : vector<16x1xf32> to vector<16x128xf32>
    %125 = arith.mulf %120, %124 : vector<16x128xf32>
    %126 = vector.broadcast %105 : vector<1x128xf32> to vector<16x128xf32>
    %127 = arith.mulf %125, %126 : vector<16x128xf32>
    %128 = vector.broadcast %107 : vector<1x128xf32> to vector<16x128xf32>
    %129 = arith.addf %127, %128 : vector<16x128xf32>
    %c0_49 = arith.constant 0 : index
    %c0_50 = arith.constant 0 : index
    %c0_51 = arith.constant 0 : index
    %130 = vector.load %arg8[%c0_49, %c0_50, %c0_51] : memref<1x128x256xf32, #tpu.memory_space<vmem>>, vector<1x128x256xf32>
    %131 = vector.shape_cast %130 : vector<1x128x256xf32> to vector<128x256xf32>
    %cst_52 = arith.constant dense<0.000000e+00> : vector<16x256xf32>
    %132 = tpu.matmul %129, %131, %cst_52 {dimension_numbers = #tpu.dot_dimension_numbers<[1], [0], [0], [1], [0, 0, 1, 1], [], []>} : vector<16x128xf32>, vector<128x256xf32>, vector<16x256xf32> -> vector<16x256xf32>
    %c0_53 = arith.constant 0 : index
    %c0_54 = arith.constant 0 : index
    %c0_55 = arith.constant 0 : index
    %133 = vector.load %arg9[%c0_53, %c0_54, %c0_55] : memref<1x1x256xf32, #tpu.memory_space<vmem>>, vector<1x1x256xf32>
    %134 = vector.shape_cast %133 : vector<1x1x256xf32> to vector<1x256xf32>
    %135 = vector.broadcast %134 : vector<1x256xf32> to vector<16x256xf32>
    %136 = arith.addf %132, %135 : vector<16x256xf32>
    %cst_56 = arith.constant 0.000000e+00 : f32
    %137 = vector.broadcast %cst_56 : f32 to vector<16x256xf32>
    %138 = arith.maximumf %136, %137 : vector<16x256xf32>
    %c0_57 = arith.constant 0 : index
    %c0_58 = arith.constant 0 : index
    %c0_59 = arith.constant 0 : index
    %139 = vector.load %arg10[%c0_57, %c0_58, %c0_59] : memref<1x256x128xf32, #tpu.memory_space<vmem>>, vector<1x256x128xf32>
    %140 = vector.shape_cast %139 : vector<1x256x128xf32> to vector<256x128xf32>
    %cst_60 = arith.constant dense<0.000000e+00> : vector<16x128xf32>
    %141 = tpu.matmul %138, %140, %cst_60 {dimension_numbers = #tpu.dot_dimension_numbers<[1], [0], [0], [1], [0, 0, 1, 1], [], []>} : vector<16x256xf32>, vector<256x128xf32>, vector<16x128xf32> -> vector<16x128xf32>
    %c0_61 = arith.constant 0 : index
    %c0_62 = arith.constant 0 : index
    %c0_63 = arith.constant 0 : index
    %142 = vector.load %arg11[%c0_61, %c0_62, %c0_63] : memref<1x1x128xf32, #tpu.memory_space<vmem>>, vector<1x1x128xf32>
    %143 = vector.shape_cast %142 : vector<1x1x128xf32> to vector<1x128xf32>
    %144 = vector.broadcast %143 : vector<1x128xf32> to vector<16x128xf32>
    %145 = arith.addf %141, %144 : vector<16x128xf32>
    %146 = arith.addf %129, %145 : vector<16x128xf32>
    %c0_64 = arith.constant 0 : index
    %c0_65 = arith.constant 0 : index
    %c0_66 = arith.constant 0 : index
    %147 = vector.load %arg14[%c0_64, %c0_65, %c0_66] : memref<1x1x128xf32, #tpu.memory_space<vmem>>, vector<1x1x128xf32>
    %148 = vector.shape_cast %147 : vector<1x1x128xf32> to vector<1x128xf32>
    %c0_67 = arith.constant 0 : index
    %c0_68 = arith.constant 0 : index
    %c0_69 = arith.constant 0 : index
    %149 = vector.load %arg15[%c0_67, %c0_68, %c0_69] : memref<1x1x128xf32, #tpu.memory_space<vmem>>, vector<1x1x128xf32>
    %150 = vector.shape_cast %149 : vector<1x1x128xf32> to vector<1x128xf32>
    %cst_70 = arith.constant dense<0.000000e+00> : vector<16xf32>
    %151 = vector.multi_reduction <add>, %146, %cst_70 [1] : vector<16x128xf32> to vector<16xf32>
    %152 = vector.shape_cast %151 : vector<16xf32> to vector<16x1xf32>
    %cst_71 = arith.constant 1.280000e+02 : f32
    %153 = vector.broadcast %cst_71 : f32 to vector<16x1xf32>
    %154 = arith.divf %152, %153 : vector<16x1xf32>
    %155 = vector.broadcast %154 : vector<16x1xf32> to vector<16x128xf32>
    %156 = arith.subf %146, %155 : vector<16x128xf32>
    %157 = arith.mulf %156, %156 : vector<16x128xf32>
    %cst_72 = arith.constant dense<0.000000e+00> : vector<16xf32>
    %158 = vector.multi_reduction <add>, %157, %cst_72 [1] : vector<16x128xf32> to vector<16xf32>
    %159 = vector.shape_cast %158 : vector<16xf32> to vector<16x1xf32>
    %cst_73 = arith.constant 1.280000e+02 : f32
    %160 = vector.broadcast %cst_73 : f32 to vector<16x1xf32>
    %161 = arith.divf %159, %160 : vector<16x1xf32>
    %162 = vector.broadcast %154 : vector<16x1xf32> to vector<16x128xf32>
    %163 = arith.subf %146, %162 : vector<16x128xf32>
    %cst_74 = arith.constant 9.99999974E-6 : f32
    %164 = vector.broadcast %cst_74 : f32 to vector<16x1xf32>
    %165 = arith.addf %161, %164 : vector<16x1xf32>
    %166 = math.rsqrt %165 : vector<16x1xf32>
    %167 = vector.broadcast %166 : vector<16x1xf32> to vector<16x128xf32>
    %168 = arith.mulf %163, %167 : vector<16x128xf32>
    %169 = vector.broadcast %148 : vector<1x128xf32> to vector<16x128xf32>
    %170 = arith.mulf %168, %169 : vector<16x128xf32>
    %171 = vector.broadcast %150 : vector<1x128xf32> to vector<16x128xf32>
    %172 = arith.addf %170, %171 : vector<16x128xf32>
    %c0_75 = arith.constant 0 : index
    %c0_76 = arith.constant 0 : index
    %173 = vector.load %arg17[%c0_75, %c0_76] : memref<16x128xf32, #tpu.memory_space<vmem>>, vector<16x128xf32>
    tpu.vector_store %arg17[%c0_75, %c0_76], %172 {strides = array<i32>} : memref<16x128xf32, #tpu.memory_space<vmem>>, vector<16x128xf32>,
    %c1_i32 = arith.constant 1 : i32
    %174 = arith.cmpi eq, %arg1, %c1_i32 : i32
    %175 = arith.extui %174 : i1 to i32
    %c0_i32_77 = arith.constant 0 : i32
    %176 = arith.cmpi ne, %175, %c0_i32_77 : i32
    scf.if %176 {
      %c0_78 = arith.constant 0 : index
      %c0_79 = arith.constant 0 : index
      %c0_80 = arith.constant 0 : index
      %177 = vector.load %arg2[%c0_78, %c0_79, %c0_80] : memref<2x8x128xf32, #tpu.memory_space<vmem>>, vector<2x8x128xf32>
      %178 = vector.shape_cast %177 : vector<2x8x128xf32> to vector<16x128xf32>
      %179 = arith.addf %172, %178 : vector<16x128xf32>
      %180 = vector.shape_cast %179 : vector<16x128xf32> to vector<2x8x128xf32>
      %c0_81 = arith.constant 0 : index
      %c0_82 = arith.constant 0 : index
      %c0_83 = arith.constant 0 : index
      %181 = vector.load %arg16[%c0_81, %c0_82, %c0_83] : memref<2x8x128xf32, #tpu.memory_space<vmem>>, vector<2x8x128xf32>
      tpu.vector_store %arg16[%c0_81, %c0_82, %c0_83], %180 {strides = array<i32>} : memref<2x8x128xf32, #tpu.memory_space<vmem>>, vector<2x8x128xf32>,
    } else {
    }
    return
  }
  func.func @transform_0(%arg0: i32, %arg1: i32) -> (i32, i32, i32) {
    %c0_i32 = arith.constant 0 : i32
    %c0_i32_0 = arith.constant 0 : i32
    %c0_i32_1 = arith.constant 0 : i32
    return %arg0, %c0_i32, %c0_i32_0 : i32, i32, i32
  }
  func.func @transform_1(%arg0: i32, %arg1: i32) -> (i32, i32, i32) {
    %c0_i32 = arith.constant 0 : i32
    %c0_i32_0 = arith.constant 0 : i32
    %c0_i32_1 = arith.constant 0 : i32
    return %arg0, %c0_i32, %c0_i32_0 : i32, i32, i32
  }
  func.func @transform_2(%arg0: i32, %arg1: i32) -> (i32, i32, i32) {
    %c0_i32 = arith.constant 0 : i32
    %c0_i32_0 = arith.constant 0 : i32
    %c0_i32_1 = arith.constant 0 : i32
    return %arg1, %c0_i32, %c0_i32_0 : i32, i32, i32
  }
  func.func @transform_3(%arg0: i32, %arg1: i32) -> (i32, i32, i32) {
    %c0_i32 = arith.constant 0 : i32
    %c0_i32_0 = arith.constant 0 : i32
    %c0_i32_1 = arith.constant 0 : i32
    return %arg1, %c0_i32, %c0_i32_0 : i32, i32, i32
  }
  func.func @transform_4(%arg0: i32, %arg1: i32) -> (i32, i32, i32) {
    %c0_i32 = arith.constant 0 : i32
    %c0_i32_0 = arith.constant 0 : i32
    %c0_i32_1 = arith.constant 0 : i32
    return %arg1, %c0_i32, %c0_i32_0 : i32, i32, i32
  }
  func.func @transform_5(%arg0: i32, %arg1: i32) -> (i32, i32, i32) {
    %c0_i32 = arith.constant 0 : i32
    %c0_i32_0 = arith.constant 0 : i32
    %c0_i32_1 = arith.constant 0 : i32
    return %arg1, %c0_i32, %c0_i32_0 : i32, i32, i32
  }
  func.func @transform_6(%arg0: i32, %arg1: i32) -> (i32, i32, i32) {
    %c0_i32 = arith.constant 0 : i32
    %c0_i32_0 = arith.constant 0 : i32
    %c0_i32_1 = arith.constant 0 : i32
    return %arg1, %c0_i32, %c0_i32_0 : i32, i32, i32
  }
  func.func @transform_7(%arg0: i32, %arg1: i32) -> (i32, i32, i32) {
    %c0_i32 = arith.constant 0 : i32
    %c0_i32_0 = arith.constant 0 : i32
    %c0_i32_1 = arith.constant 0 : i32
    return %arg1, %c0_i32, %c0_i32_0 : i32, i32, i32
  }
  func.func @transform_8(%arg0: i32, %arg1: i32) -> (i32, i32, i32) {
    %c0_i32 = arith.constant 0 : i32
    %c0_i32_0 = arith.constant 0 : i32
    %c0_i32_1 = arith.constant 0 : i32
    return %arg1, %c0_i32, %c0_i32_0 : i32, i32, i32
  }
  func.func @transform_9(%arg0: i32, %arg1: i32) -> (i32, i32, i32) {
    %c0_i32 = arith.constant 0 : i32
    %c0_i32_0 = arith.constant 0 : i32
    %c0_i32_1 = arith.constant 0 : i32
    return %arg1, %c0_i32, %c0_i32_0 : i32, i32, i32
  }
  func.func @transform_10(%arg0: i32, %arg1: i32) -> (i32, i32, i32) {
    %c0_i32 = arith.constant 0 : i32
    %c0_i32_0 = arith.constant 0 : i32
    %c0_i32_1 = arith.constant 0 : i32
    return %arg1, %c0_i32, %c0_i32_0 : i32, i32, i32
  }
  func.func @transform_11(%arg0: i32, %arg1: i32) -> (i32, i32, i32) {
    %c0_i32 = arith.constant 0 : i32
    %c0_i32_0 = arith.constant 0 : i32
    %c0_i32_1 = arith.constant 0 : i32
    return %arg1, %c0_i32, %c0_i32_0 : i32, i32, i32
  }
  func.func @transform_12(%arg0: i32, %arg1: i32) -> (i32, i32, i32) {
    %c0_i32 = arith.constant 0 : i32
    %c0_i32_0 = arith.constant 0 : i32
    %c0_i32_1 = arith.constant 0 : i32
    return %arg1, %c0_i32, %c0_i32_0 : i32, i32, i32
  }
  func.func @transform_13(%arg0: i32, %arg1: i32) -> (i32, i32, i32) {
    %c0_i32 = arith.constant 0 : i32
    %c0_i32_0 = arith.constant 0 : i32
    %c0_i32_1 = arith.constant 0 : i32
    return %arg1, %c0_i32, %c0_i32_0 : i32, i32, i32
  }
  func.func @transform_14(%arg0: i32, %arg1: i32) -> (i32, i32, i32) {
    %c0_i32 = arith.constant 0 : i32
    %c0_i32_0 = arith.constant 0 : i32
    %c0_i32_1 = arith.constant 0 : i32
    return %arg0, %c0_i32, %c0_i32_0 : i32, i32, i32
  }
}

</mosaic_0001>

<bundles_post_ra>
// kernel: tpu_custom_call.1
= control target key start
LH: loop header
LB: loop body
LE: loop exit
PB: predicated region body
PF: predicated region fallthrough
CT: control target
= control target key end

     0   :  { %s3718_s0 = inlined_call_operand.hbm [shape: f32[4,8,128], index: 0, kind: input, shape index: {}]   ;;  %s3719_s1 = inlined_call_operand.hbm [shape: f32[4,1,8], index: 1, kind: input, shape index: {}]   ;;  %s3720_s2 = inlined_call_operand.hbm [shape: f32[2,128,384], index: 2, kind: input, shape index: {}]   ;;  %s3721_s3 = inlined_call_operand.hbm [shape: f32[2,1,384], index: 3, kind: input, shape index: {}]   ;;  %s3722_s4 = inlined_call_operand.hbm [shape: f32[2,128,128], index: 4, kind: input, shape index: {}]   ;;  %s3723_s5 = inlined_call_operand.vmem [shape: f32[2,1,128], index: 5, kind: input, shape index: {}]   ;;  %s3724_s6 = inlined_call_operand.hbm [shape: f32[2,128,256], index: 6, kind: input, shape index: {}]   ;;  %s3725_s7 = inlined_call_operand.vmem [shape: f32[2,1,256], index: 7, kind: input, shape index: {}]   ;;  %s3726_s8 = inlined_call_operand.hbm [shape: f32[2,256,128], index: 8, kind: input, shape index: {}]   ;;  %s3727_s9 = inlined_call_operand.vmem [shape: f32[2,1,128], index: 9, kind: input, shape index: {}]   ;;  %s3728_s10 = inlined_call_operand.hbm [shape: f32[2,1,128], index: 10, kind: input, shape index: {}]   ;;  %s3729_s11 = inlined_call_operand.vmem [shape: f32[2,1,128], index: 11, kind: input, shape index: {}]   ;;  %s3730_s12 = inlined_call_operand.hbm [shape: f32[2,1,128], index: 12, kind: input, shape index: {}]   ;;  %s3731_s13 = inlined_call_operand.vmem [shape: f32[2,1,128], index: 13, kind: input, shape index: {}]   ;;  %s3732_s14 = inlined_call_operand.hbm [shape: f32[4,8,128], index: 14, kind: output, shape index: {}]  }
   0x1   :  { %3762 = sst [smem:[#allocation46_spill]] %s3718_s0 }
   0x2   :  { %3763 = sst [smem:[#allocation47_spill]] %s3719_s1 }
   0x3   :  { %3764 = sst [smem:[#allocation48_spill]] %s3720_s2 }
   0x4   :  { %3765 = sst [smem:[#allocation49_spill]] %s3721_s3 }
   0x5   :  { %3766 = sst [smem:[#allocation50_spill]] %s3722_s4 }
   0x6   :  { %3767 = sst [smem:[#allocation51_spill]] %s3723_s5 }
   0x7   :  { %3768 = sst [smem:[#allocation52_spill]] %s3724_s6 }
   0x8   :  { %3769 = sst [smem:[#allocation53_spill]] %s3725_s7 }
   0x9   :  { %3770 = sst [smem:[#allocation54_spill]] %s3726_s8 }
   0xa   :  { %3771 = sst [smem:[#allocation55_spill]] %s3727_s9 }
   0xb   :  { %3772 = sst [smem:[#allocation56_spill]] %s3728_s10 }
   0xc   :  { %3773 = sst [smem:[#allocation57_spill]] %s3729_s11 }
   0xd   :  { %3774 = sst [smem:[#allocation58_spill]] %s3730_s12 }
   0xe   :  { %3775 = sst [smem:[#allocation59_spill]] %s3731_s13 }
   0xf   :  { %3776 = sst [smem:[#allocation60_spill]] %s3732_s14 }
  0x10   :  { %19 = vsyncpa [#allocation4], 0 }
  0x11   :  { %21 = vsyncpa [#allocation4 + $0x1], 0 }
  0x12   :  { %22 = vsyncpa [#allocation7], 0 }
  0x13   :  { %24 = vsyncpa [#allocation7 + $0x1], 0 }
  0x14   :  { %25 = vsyncpa [#allocation10], 0 }
  0x15   :  { %27 = vsyncpa [#allocation10 + $0x1], 0 }
  0x16   :  { %28 = vsyncpa [#allocation13], 0 }
  0x17   :  { %30 = vsyncpa [#allocation13 + $0x1], 0 }
  0x18   :  { %31 = vsyncpa [#allocation16], 0 }
  0x19   :  { %33 = vsyncpa [#allocation16 + $0x1], 0 }
  0x1a   :  { %34 = vsyncpa [#allocation5], 0 }
  0x1b   :  { %36 = vsyncpa [#allocation5 + $0x1], 0  ;;  %s3001_s29 = smov 0   ;;  %s3003_s30 = smov 0  }
  0x1c   :  { %s3005_s15 = smov 0   ;;  %s3007_s16 = smov 0  }
  0x1d   :  { %s3009_s17 = smov 0   ;;  %s3011_s18 = smov 0  }
  0x1e   :  { %s3013_s19 = smov 0   ;;  %s3015_s20 = smov 0  }
  0x1f   :  { %s3017_s21 = smov 0   ;;  %s3019_s22 = smov 0  }
  0x20   :  { %s3021_s23 = smov 0  }
  0x21 LB: > { %3777 = sst [smem:[#allocation26_spill]] %s2875_s30  ;;  %s3057_s24 = sadd.s32 4294967295, %s2911_s23   ;;  %s2911_s23 = sphi %s3021_s23, %s42_s23   ;;  %s2907_s22 = sphi %s3019_s22, %s3857_s22   ;;  %s2903_s21 = sphi %s3017_s21, %s3856_s21   ;;  %s2899_s20 = sphi %s3015_s20, %s3855_s20   ;;  %s2895_s19 = sphi %s3013_s19, %s3854_s19   ;;  %s2891_s18 = sphi %s3011_s18, %s3853_s18   ;;  %s2887_s17 = sphi %s3009_s17, %s3852_s17   ;;  %s2883_s16 = sphi %s3007_s16, %s3851_s16   ;;  %s2879_s15 = sphi %s3005_s15, %s3850_s15   ;;  %s2875_s30 = sphi %s3003_s30, %s3849_s30   ;;  %s2871_s29 = sphi %s3001_s29, %s3848_s29  }
  0x22   : > { %3778 = sst [smem:[#allocation27_spill]] %s2879_s15  ;;  %s2226_s25 = sadd.s32 4294967294, %s2911_s23  }
  0x23   : > { %3779 = sst [smem:[#allocation28_spill]] %s2883_s16  ;;  %s3734_s26 = sadd.s32 1, %s2903_s21 }
  0x24   : > { %3780 = sst [smem:[#allocation29_spill]] %s2887_s17  ;;  %s54_s27 = sadd.s32 1, %s2907_s22 }
  0x25   : > { %3781 = sst [smem:[#allocation30_spill]] %s2891_s18  ;;  %p3064_p0 = scmp.ge.s32.totalorder %s3734_s26, 2 }
  0x26   : > { %3782 = sst [smem:[#allocation31_spill]] %s2895_s19  ;;  %s61_s14 = sadd.s32 1, %s2891_s18 }
  0x27   : > { %3783 = sst [smem:[#allocation32_spill]] %s2899_s20  ;;  %p68_p1 = scmp.ne.s32.totalorder %s2891_s18, %s2887_s17 }
  0x28   : > { %3784 = sst [smem:[#allocation33_spill]] %s2903_s21  ;;  %p69_p2 = scmp.eq.s32.totalorder %s2911_s23, 0 }
  0x29   : > { %3785 = sst [smem:[#allocation34_spill]] %s2907_s22  ;;  %s3859_s27 = smov (!%p3064_p0, %s54_s27), %s2907_s22 }
  0x2a   : > { %3786 = sst [smem:[#allocation35_spill]] %s2911_s23  ;;  %p3077_p3 = por %p69_p2, %p68_p1 }
  0x2b   : > { %3787 = sst [smem:[#allocation36_spill]] %s3057_s24  ;;  %p74_p4 = scmp.ne.s32.totalorder %s2887_s17, %s2883_s16 }
  0x2c   : > { %p56_p5 = scmp.ge.s32.totalorder %s3859_s27, 2  ;;  %p75_p6 = scmp.eq.s32.totalorder %s3057_s24, 0 }
  0x2d   : > { %p436_p7 = scmp.eq.s32.totalorder %s3057_s24, 3  ;;  %p442_p8 = scmp.eq.s32.totalorder %s2226_s25, 3 }
  0x2e   : > { %s3861_s27 = smov (%p56_p5, %s3859_s27), 0  ;;  %p3089_p9 = por %p75_p6, %p74_p4 }
  0x2f   : > { %3790 = sst [smem:[#allocation37_spill]] %s3861_s27  ;;  %p3093_p10 = por %p436_p7, %p68_p1 }
  0x30   : > { %s3791_s26 = scalar_select %p3089_p9, 1, 0 }
  0x31   : > { %s3793_s13 = scalar_select %p3093_p10, 1, 0 }
  0x32   : > { %3792 = sst [smem:[#allocation38_spill]] %s3791_s26  ;;  %s58_s11 = ssub.s32 %s2907_s22, %s3861_s27 }
  0x33   : > { %3794 = sst [smem:[#allocation39_spill]] %s3793_s13  ;;  %p3099_p11 = por %p442_p8, %p74_p4 }
  0x34   : > { %p59_p12 = scmp.eq.s32.totalorder %s58_s11, 0  ;;  %p2346_p13 = scmp.lt.s32.totalorder %s2911_s23, 4 }
  0x35   : > { %s3795_s16 = scalar_select %p3099_p11, 1, 0 }
  0x36   : > { %s3105_s25 = sand.u32 1, %s2891_s18   ;;  %p3114_p1 = pnand %p2346_p13, %p3077_p3 }
  0x37   : > { %3796 = sst [smem:[#allocation40_spill]] %s3795_s16  ;;  %s3119_s27 = sand.u32 1, %s2911_s23  }
  0x38   : > { %s3108_s9 = scalar_select %p59_p12, %s2891_s18, %s61_s14  }
  0x39   : > { %s2232_s11 = sshll.u32 %s3105_s25, 1  ;;  %s2233_s16 = sshll.u32 %s2907_s22, 1 }
  0x3a   : > { %3797 = sst [smem:[#allocation41_spill]] %s3108_s9  ;;  %s488_s14 = scalar_lea.vmem [#allocation6], %s2232_s11 }
  0x3b   : > { %s495_s20 = sshll.u32 %s488_s14, 4  ;;  %s3799_s1 = sld [smem:[#allocation47_spill]]  ;;  %s496_s20 = int_to_ptr.vmem [resolvable:$true] %s495_s20 }
  0x3c   : > { %s3745_s19 = scalar_lea.sflag [#allocation7], %s3119_s27  ;;  %s3746_s26 = smov 16  }
  0x3d   : > { %s2914_s17 = smov 1   ;;  %p2244_p3 = scmp.ge.s32.totalorder %s2911_s23, 1 }
  0x3e   : > { %p675_p4 = scmp.lt.s32.totalorder %s2911_s23, 5  ;;  %p120_p7 = scmp.ne.s32.totalorder %s2879_s15, %s2875_s30 }
  0x3f   : > { %p126_p8 = scmp.ne.s32.totalorder %s2875_s30, %s2871_s29  ;;  %s3153_s11 = sand.u32 1, %s2879_s15  }
  0x40   : > { %p3135_p5 = pnand %p2244_p3, %p675_p4  ;;  %p122_p3 = por %p120_p7, %p69_p2 }
  0x41   : > { %s492_s13 = scalar_lea.hbm %s3799_s1, %s2233_s16  ;;  %s3802_s16 = sadd.s32 1, %s2903_s21 }
  0x42   : > { %s493_s5 = sshll.u32 %s492_s13, 4  ;;  %s113_s13 = sadd.s32 1, %s2879_s15  ;;  %s494_s5 = int_to_ptr.hbm [resolvable:$true] %s493_s5 }
  0x43   : > { %2320 = dma.hbm_to_vmem [thread:$0]  (!%p3114_p1), %s494_s5, 32, %s496_s20, %s3745_s19, %s3746_s26, %s3746_s26, %s2914_s17  }
  0x44   : > { %s3800_s9 = scalar_select %p3135_p5, 1, 0 }
  0x45   : > { %s3863_s16 = smov (%p3064_p0, %s3802_s16), 0  ;;  %p3159_p4 = por %p126_p8, %p75_p6 }
  0x46   : > { %3801 = sst [smem:[#allocation42_spill]] %s3800_s9  ;;  %s110_s18 = ssub.s32 %s2903_s21, %s3863_s16 }
  0x47   : > { %3803 = sst [smem:[#allocation43_spill]] %s3863_s16  ;;  %p111_p12 = scmp.eq.s32.totalorder %s110_s18, 0 }
  0x48   : > { %s3804_s5 = scalar_select %p3159_p4, 1, 0 }
  0x49   : > { %s3164_s17 = scalar_select %p111_p12, %s2879_s15, %s113_s13  }
  0x4a   : > { %3805 = sst [smem:[#allocation44_spill]] %s3804_s5  ;;  %p3168_p0 = pnand %p2346_p13, %p122_p3 }
  0x4b   : > { %3806 = sst [smem:[#allocation45_spill]] %s3164_s17  ;;  %s2290_s28 = smul.u32 3, %s3153_s11 }
  0x4c   : > { %s2291_s14 = smul.u32 3, %s2903_s21  ;;  %s3808_s3 = sld [smem:[#allocation49_spill]] }
  0x4d   : > { %s531_s26 = scalar_lea.vmem [#allocation9], %s2290_s28  ;;  %s2238_s13 = sshll.u32 %s3153_s11, 8 }
  0x4e   : > { %s539_s1 = sshll.u32 %s531_s26, 4  ;;  %s3753_s17 = scalar_lea.sflag [#allocation10], %s3119_s27  ;;  %s540_s1 = int_to_ptr.vmem [resolvable:$true] %s539_s1 }
  0x4f   : > { %s2285_s15 = sshll.u32 %s2903_s21, 8  ;;  %s3809_s6 = sld [smem:[#allocation52_spill]] }
  0x50   : > { %s2915_s18 = smov 256   ;;  %s3811_s8 = sld [smem:[#allocation54_spill]] }
  0x51   : > { %s3812_s10 = sld [smem:[#allocation56_spill]]  ;;  %s634_s24 = scalar_lea.vmem [#allocation15], %s3153_s11 }
  0x52   : > { %s535_s19 = scalar_lea.hbm %s3808_s3, %s2291_s14  ;;  %s578_s14 = scalar_lea.vmem [#allocation12], %s2238_s13 }
  0x53   : > { %s537_s16 = sshll.u32 %s535_s19, 4  ;;  %s586_s28 = sshll.u32 %s578_s14, 4  ;;  %s538_s16 = int_to_ptr.hbm [resolvable:$true] %s537_s16  ;;  %s587_s28 = int_to_ptr.vmem [resolvable:$true] %s586_s28 }
  0x54   : > { %2326 = dma.hbm_to_vmem [thread:$0]  (!%p3168_p0), %s538_s16, 48, %s540_s1, %s3753_s17  }
  0x55   : > { %s583_s20 = scalar_lea.hbm %s3809_s6, %s2285_s15  ;;  %s3758_s19 = scalar_lea.sflag [#allocation13], %s3119_s27 }
  0x56   : > { %s584_s26 = sshll.u32 %s583_s20, 4  ;;  %s3810_s3 = smov 16   ;;  %s585_s26 = int_to_ptr.hbm [resolvable:$true] %s584_s26 }
  0x57   : > { %2332 = dma.hbm_to_vmem [thread:$0]  (!%p3168_p0), %s585_s26, 4096, %s587_s28, %s3758_s19, %s2915_s18, %s2915_s18, %s3810_s3  }
  0x58   : > { %s612_s16 = scalar_lea.hbm %s3811_s8, %s2285_s15  ;;  %s607_s14 = scalar_lea.vmem [#allocation14], %s2238_s13 }
  0x59   : > { %s613_s5 = sshll.u32 %s612_s16, 4  ;;  %s615_s20 = sshll.u32 %s607_s14, 4  ;;  %s3196_s5 = int_to_ptr.hbm [resolvable:$true] %s613_s5  ;;  %s3198_s20 = int_to_ptr.vmem [resolvable:$true] %s615_s20 }
  0x5a   : > { %s637_s30 = scalar_lea.hbm %s3812_s10, %s2903_s21  ;;  %s641_s9 = sshll.u32 %s634_s24, 4  ;;  %s642_s9 = int_to_ptr.vmem [resolvable:$true] %s641_s9 }
  0x5b   : > { %s639_s3 = sshll.u32 %s637_s30, 4  ;;  %s3757_s15 = scalar_lea.sflag [#allocation16], %s3119_s27  ;;  %s640_s3 = int_to_ptr.hbm [resolvable:$true] %s639_s3 }
  0x5c   : > { %2338 = dma.hbm_to_vmem [thread:$0]  (!%p3168_p0), %s640_s3, 16, %s642_s9, %s3757_s15  }
  0x5d   : > { %s2229_s13 = sshll.u32 %s3105_s25, 4  ;;  %s2283_s28 = sshll.u32 %s2907_s22, 4 }
  0x5e   : > { %s3813_s0 = sld [smem:[#allocation46_spill]]  ;;  %s466_s1 = scalar_lea.vmem [#allocation3], %s2229_s13 }
  0x5f   : > { %s474_s24 = sshll.u32 %s466_s1, 4  ;;  %s463_s30 = scalar_lea.sflag [#allocation4], %s3105_s25  ;;  %s475_s24 = int_to_ptr.vmem [resolvable:$true] %s474_s24 }
  0x60   : > { %s2916_s23 = smov 128   ;;  %s2917_s16 = smov 8  }
  0x61   : > { %s2288_s9 = smul.u32 384, %s3153_s11  ;;  %s2235_s3 = sshll.u32 %s3153_s11, 7 }
  0x62   : > { %s2289_s14 = smul.u32 384, %s2903_s21  ;;  %s3814_s2 = sld [smem:[#allocation48_spill]] }
  0x63   : > { %s509_s13 = scalar_lea.vmem [#allocation8], %s2288_s9  ;;  %s2918_s7 = smov 384  }
  0x64   : > { %s471_s6 = scalar_lea.hbm %s3813_s0, %s2283_s28  ;;  %s517_s26 = sshll.u32 %s509_s13, 4  ;;  %s518_s26 = int_to_ptr.vmem [resolvable:$true] %s517_s26 }
  0x65   : > { %s472_s17 = sshll.u32 %s471_s6, 4  ;;  %s2919_s18 = smov 24   ;;  %s473_s17 = int_to_ptr.hbm [resolvable:$true] %s472_s17 }
  0x66   : > { %2317 = dma.hbm_to_vmem [thread:$0]  (!%p3114_p1), %s473_s17, 256, %s475_s24, %s463_s30, %s2916_s23, %s2916_s23, %s2917_s16  }
  0x67   : > { %s3815_s6 = scalar_lea.sflag [#allocation7], %s3119_s27  ;;  %s2284_s19 = sshll.u32 %s2903_s21, 7 }
  0x68   : > { %s514_s28 = scalar_lea.hbm %s3814_s2, %s2289_s14  ;;  %s550_s15 = scalar_lea.vmem [#allocation11], %s2235_s3 }
  0x69   : > { %s515_s25 = sshll.u32 %s514_s28, 4  ;;  %s558_s17 = sshll.u32 %s550_s15, 4  ;;  %s516_s25 = int_to_ptr.hbm [resolvable:$true] %s515_s25  ;;  %s559_s17 = int_to_ptr.vmem [resolvable:$true] %s558_s17 }
  0x6a   : > { %2323 = dma.hbm_to_vmem [thread:$0]  (!%p3168_p0), %s516_s25, 6144, %s518_s26, %s3815_s6, %s2918_s7, %s2918_s7, %s2919_s18  }
  0x6b   : > { %s3816_s4 = sld [smem:[#allocation50_spill]]  ;;  %s3818_s0 = scalar_lea.sflag [#allocation10], %s3119_s27 }
  0x6c   : > { %s3817_s12 = sld [smem:[#allocation58_spill]]  ;;  %s3819_s26 = scalar_lea.sflag [#allocation13], %s3119_s27 }
  0x6d   : > { %2335 = dma.hbm_to_vmem [thread:$0]  (!%p3168_p0), %s3196_s5, 4096, %s3198_s20, %s3819_s26, %s2916_s23, %s2916_s23, %s2917_s16  }
  0x6e   : > { %s657_s3 = scalar_lea.vmem [#allocation17], %s3153_s11  ;;  %s3820_s18 = scalar_lea.sflag [#allocation16], %s3119_s27 }
  0x6f   : > { %s664_s7 = sshll.u32 %s657_s3, 4  ;;  %s665_s7 = int_to_ptr.vmem [resolvable:$true] %s664_s7 }
  0x71   : > { %s555_s30 = scalar_lea.hbm %s3816_s4, %s2284_s19  ;;  %679 = sbr.rel (%p3135_p5) target bundleno = 2759 (0xac7), region = 76 }
  0x72   : > { %s556_s9 = sshll.u32 %s555_s30, 4  ;;  %s660_s13 = scalar_lea.hbm %s3817_s12, %s2903_s21  ;;  %s557_s9 = int_to_ptr.hbm [resolvable:$true] %s556_s9 }
  0x73   : > { %2329 = dma.hbm_to_vmem [thread:$0]  (!%p3168_p0), %s557_s9, 2048, %s559_s17, %s3818_s0, %s2916_s23, %s2916_s23, %s2917_s16  }
  0x74   : > { %s662_s25 = sshll.u32 %s660_s13, 4  ;;  %s3822_s19 = sld [smem:[#allocation29_spill]] (!%p3135_p5)  ;;  %s663_s25 = int_to_ptr.hbm [resolvable:$true] %s662_s25 }
  0x75   : > { %2341 = dma.hbm_to_vmem [thread:$0]  (!%p3168_p0), %s663_s25, 16, %s665_s7, %s3820_s18  }
  0x7a   : > { %s3254_s1 = sand.u32 1, %s3822_s19  }
  0x7b   : > { %s3759_s0 = sshll.u32 %s3254_s1, 4  ;;  %s682_s5 = scalar_lea.sflag [#allocation4], %s3254_s1 }
  0x7c   : > { %s3260_s11 = scalar_lea.vmem [#allocation3], %s3759_s0 }
  0x7d   : > { %2842 = dma.done.wait (%p3089_p9), %s682_s5, 256  }
  0x7e   : > { %2844 = vsyncadd (%p3089_p9), %s682_s5, 4294967040  ;;  %s3824_s27 = sld [smem:[#allocation36_spill]]  ;;  %s2246_s20 = sshll.u32 %s3254_s1, 1 }
  0x7f   : > { %s3268_s16 = scalar_lea.vmem [#allocation6], %s2246_s20 }
  0x84   : > { %s691_s29 = sand.u32 1, %s3824_s27  }
  0x85   : > { %s692_s23 = scalar_lea.sflag [#allocation7], %s691_s29 }
  0x86   : > { %2846 = dma.done.wait (%p3089_p9), %s692_s23, 32  }
  0x87   : > { %2848 = vsyncadd (%p3089_p9), %s692_s23, 4294967264  ;;  %s3825_s17 = sld [smem:[#allocation26_spill]] }
  0x8d   : > { %s3275_s30 = sand.u32 1, %s3825_s17  }
  0x8e   : > { %s2292_s9 = smul.u32 384, %s3275_s30 }
  0x90   : > { %s3278_s14 = scalar_lea.vmem [#allocation8], %s2292_s9 }
  0x91   : > { %2850 = dma.done.wait (%p3159_p4), %s692_s23, 6144  }
  0x92   : > { %2852 = vsyncadd (%p3159_p4), %s692_s23, 4294961152  ;;  %s2293_s28 = smul.u32 3, %s3275_s30  ;;  %s712_s13 = scalar_lea.sflag [#allocation10], %s691_s29 }
  0x94   : > { %s3285_s26 = scalar_lea.vmem [#allocation9], %s2293_s28 }
  0x95   : > { %2854 = dma.done.wait (%p3159_p4), %s712_s13, 2096  }
  0x96   : > { %2856 = vsyncadd (%p3159_p4), %s712_s13, 4294965200  ;;  %s2247_s25 = sshll.u32 %s3275_s30, 7  ;;  %s2248_s3 = sshll.u32 %s3275_s30, 8 }
  0x97   : > { %s3293_s7 = scalar_lea.vmem [#allocation11], %s2247_s25  ;;  %s732_s18 = scalar_lea.sflag [#allocation13], %s691_s29 }
  0x98   : > { %s3295_s6 = scalar_lea.vmem [#allocation12], %s2248_s3 }
  0x99   : > { %2858 = dma.done.wait (%p3159_p4), %s732_s18, 8192  }
  0x9a   : > { %2860 = vsyncadd (%p3159_p4), %s732_s18, 4294959104  ;;  %s3301_s19 = scalar_lea.vmem [#allocation14], %s2248_s3  ;;  %s752_s15 = scalar_lea.sflag [#allocation16], %s691_s29 }
  0x9b   : > { %2862 = dma.done.wait (%p3159_p4), %s752_s15, 32  }
  0x9c   : > { %2864 = vsyncadd (%p3159_p4), %s752_s15, 4294967264  ;;  %s3827_s27 = sld [smem:[#allocation31_spill]]  ;;  %s763_s21 = scalar_lea.vmem [#allocation17], %s3275_s30 }
  0x9d   : > { %s3829_s25 = sld [smem:[#allocation53_spill]]  ;;  %s3833_s9 = sshll.u32 %s3254_s1, 4 }
  0x9e   : > { %s3830_s5 = sld [smem:[#allocation55_spill]]  ;;  %s3337_s29 = scalar_lea.vmem [#allocation18], %s3833_s9 }
  0x9f   : > { %s3831_s8 = sld [smem:[#allocation57_spill]] }
  0xa0   : > { %s3832_s12 = sld [smem:[#allocation59_spill]] }
  0xa2   : > { %p865_p2 = scmp.lt.s32.totalorder %s3827_s27, 1  ;;  %p2252_p6 = scmp.ne.s32.totalorder %s3827_s27, 0 }
  0xa4   : > { %s3310_s20 = scalar_select %p865_p2, %s3827_s27, 1 }
  0xa5   : > { %885 = sbr.rel (%p2252_p6) target bundleno = 173 (0xad), region = 116 }
  0xa6   : > { %s2251_s28 = sshll.u32 %s3310_s20, 1  ;;  %s874_s0 = scalar_lea.vmem %s3830_s5, %s3310_s20 }
  0xa7   : > { %s3320_s3 = scalar_lea.vmem %s3829_s25, %s2251_s28  ;;  %s877_s10 = scalar_lea.vmem %s3831_s8, %s3310_s20 }
  0xa8   : > { %s880_s22 = scalar_lea.vmem %s3832_s12, %s3310_s20 }
  0xaa   : > { %v886_v0 = vld [vmem:[%s3260_s11] sm:$0xff]  ;;  %v887_v1 = vld [vmem:[%s3260_s11 + $0x8] sm:$0xff] }
  0xab   : > { %888 = vst [vmem:[#allocation2] sm:$0xff] %v886_v0 }
  0xac   : > { %889 = vst [vmem:[#allocation2 + $0x8] sm:$0xff] %v887_v1 }
  0xad PF: > { %v938_v2 = vld [vmem:[%s3278_s14 + $0x170] sm:$0xff]  ;;  %v937_v3 = vld [vmem:[%s3278_s14 + $0x168] sm:$0xff]  ;;  %v935_v4 = vld [vmem:[%s3278_s14 + $0x158] sm:$0xff]  ;;  %vm1027_vm0 = vcmask 261120   ;;  %s2920_s2 = smov 96   ;;  %s2921_s4 = smov 64  }
  0xae   : > { %971 = vmatpush.msra.mxu1 %v938_v2  ;;  %948 = vmatpush.msra.mxu0 %v937_v3  ;;  %v934_v5 = vld [vmem:[%s3278_s14 + $0x150] sm:$0xff]  ;;  %v932_v6 = vld [vmem:[%s3278_s14 + $0x140] sm:$0xff]  ;;  %v931_v7 = vld [vmem:[%s3278_s14 + $0x138] sm:$0xff]  ;;  %vm1080_vm1 = vcmask 64512   ;;  %s2922_s8 = smov 32   ;;  %vm1567_vm2 = vcmask 523264  }
  0xaf   : > { %v929_v8 = vld [vmem:[%s3278_s14 + $0x128] sm:$0xff]  ;;  %v928_v9 = vld [vmem:[%s3278_s14 + $0x120] sm:$0xff]  ;;  %v926_v10 = vld [vmem:[%s3278_s14 + $0x110] sm:$0xff]  ;;  %vm1570_vm3 = vcmask 785408  }
  0xb0   : > { %972 = vmatpush.msra.mxu1 %v935_v4  ;;  %949 = vmatpush.msra.mxu0 %v934_v5  ;;  %v925_v11 = vld [vmem:[%s3278_s14 + $0x108] sm:$0xff]  ;;  %v923_v12 = vld [vmem:[%s3278_s14 + $0xf8] sm:$0xff]  ;;  %v922_v13 = vld [vmem:[%s3278_s14 + $0xf0] sm:$0xff] }
  0xb1   : > { %v920_v14 = vld [vmem:[%s3278_s14 + $0xe0] sm:$0xff]  ;;  %v919_v15 = vld [vmem:[%s3278_s14 + $0xd8] sm:$0xff]  ;;  %v917_v16 = vld [vmem:[%s3278_s14 + $0xc8] sm:$0xff] }
  0xb2   : > { %973 = vmatpush.msra.mxu1 %v932_v6  ;;  %950 = vmatpush.msra.mxu0 %v931_v7  ;;  %v916_v17 = vld [vmem:[%s3278_s14 + $0xc0] sm:$0xff]  ;;  %v914_v18 = vld [vmem:[%s3278_s14 + $0xb0] sm:$0xff]  ;;  %v913_v19 = vld [vmem:[%s3278_s14 + $0xa8] sm:$0xff] }
  0xb3   : > { %v911_v20 = vld [vmem:[%s3278_s14 + $0x98] sm:$0xff]  ;;  %v910_v21 = vld [vmem:[%s3278_s14 + $0x90] sm:$0xff]  ;;  %v908_v22 = vld [vmem:[%s3278_s14 + $0x80] sm:$0xff] }
  0xb4   : > { %974 = vmatpush.msra.mxu1 %v929_v8  ;;  %951 = vmatpush.msra.mxu0 %v928_v9  ;;  %v907_v23 = vld [vmem:[%s3278_s14 + $0x78] sm:$0xff]  ;;  %v905_v24 = vld [vmem:[%s3278_s14 + $0x68] sm:$0xff]  ;;  %v904_v25 = vld [vmem:[%s3278_s14 + $0x60] sm:$0xff] }
  0xb5   : > { %v902_v26 = vld [vmem:[%s3278_s14 + $0x50] sm:$0xff]  ;;  %v901_v27 = vld [vmem:[%s3278_s14 + $0x48] sm:$0xff]  ;;  %v899_v28 = vld [vmem:[%s3278_s14 + $0x38] sm:$0xff] }
  0xb6   : > { %975 = vmatpush.msra.mxu1 %v926_v10  ;;  %952 = vmatpush.msra.mxu0 %v925_v11  ;;  %v898_v29 = vld [vmem:[%s3278_s14 + $0x30] sm:$0xff]  ;;  %v896_v30 = vld [vmem:[%s3278_s14 + $0x20] sm:$0xff]  ;;  %v895_v31 = vld [vmem:[%s3278_s14 + $0x18] sm:$0xff] }
  0xb7   : > { %v893_v32 = vld [vmem:[%s3278_s14 + $0x8] sm:$0xff]  ;;  %v892_v33 = vld [vmem:[%s3278_s14] sm:$0xff]  ;;  %v3378_v35 = vld [vmem:[#allocation2 + $0x8] sm:$0xff] }
  0xb8   : > { %976 = vmatpush.msra.mxu1 %v923_v12  ;;  %953 = vmatpush.msra.mxu0 %v922_v13  ;;  %v3374_v34 = vld [vmem:[#allocation2] sm:$0xff]  ;;  %v3383_v36 = vld [vmem:[%s3285_s26] sm:$0x7]  ;;  %v3412_v49 = vld [vmem:[%s3268_s16] ss:$0 sm:$0xff] }
  0xb9   : > { %v943_v37 = vperm.slane %v3383_v36, 1  ;;  %v942_v38 = vperm.slane %v3383_v36, 0  ;;  %v939_v51 = vld [vmem:[%s3278_s14 + $0x178] sm:$0xff]  ;;  %v936_v52 = vld [vmem:[%s3278_s14 + $0x160] sm:$0xff]  ;;  %v933_v54 = vld [vmem:[%s3278_s14 + $0x148] sm:$0xff] }
  0xba   : > { %977 = vmatpush.msra.mxu1 %v920_v14  ;;  %954 = vmatpush.msra.mxu0 %v919_v15  ;;  %v930_v56 = vld [vmem:[%s3278_s14 + $0x130] sm:$0xff]  ;;  %v3421_v57 = vld [vmem:[%s3268_s16 + $0x1] ss:$0 sm:$0xff]  ;;  %v924_v60 = vld [vmem:[%s3278_s14 + $0x100] sm:$0xff] }
  0xbb   : > { %994 = vmatpush.msra.mxu2 %v939_v51  ;;  %v927_v58 = vld [vmem:[%s3278_s14 + $0x118] sm:$0xff]  ;;  %v921_v62 = vld [vmem:[%s3278_s14 + $0xe8] sm:$0xff]  ;;  %v918_v0 = vld [vmem:[%s3278_s14 + $0xd0] sm:$0xff] }
  0xbc   : > { %978 = vmatpush.msra.mxu1 %v917_v16  ;;  %955 = vmatpush.msra.mxu0 %v916_v17  ;;  %v915_v1 = vld [vmem:[%s3278_s14 + $0xb8] sm:$0xff]  ;;  %v912_v2 = vld [vmem:[%s3278_s14 + $0xa0] sm:$0xff]  ;;  %v909_v3 = vld [vmem:[%s3278_s14 + $0x88] sm:$0xff] }
  0xbd   : > { %995 = vmatpush.msra.mxu2 %v936_v52  ;;  %v906_v4 = vld [vmem:[%s3278_s14 + $0x70] sm:$0xff]  ;;  %v903_v5 = vld [vmem:[%s3278_s14 + $0x58] sm:$0xff]  ;;  %v900_v6 = vld [vmem:[%s3278_s14 + $0x40] sm:$0xff] }
  0xbe   : > { %979 = vmatpush.msra.mxu1 %v914_v18  ;;  %956 = vmatpush.msra.mxu0 %v913_v19  ;;  %v897_v7 = vld [vmem:[%s3278_s14 + $0x28] sm:$0xff]  ;;  %v894_v8 = vld [vmem:[%s3278_s14 + $0x10] sm:$0xff]  ;;  %v944_v19 = vperm.slane %v3383_v36, 2  ;;  %s3834_s14 = sld [smem:[#allocation51_spill]] }
  0xbf   : > { %996 = vmatpush.msra.mxu2 %v933_v54 }
  0xc0   : > { %980 = vmatpush.msra.mxu1 %v911_v20  ;;  %957 = vmatpush.msra.mxu0 %v910_v21 }
  0xc1   : > { %997 = vmatpush.msra.mxu2 %v930_v56 }
  0xc2   : > { %981 = vmatpush.msra.mxu1 %v908_v22  ;;  %958 = vmatpush.msra.mxu0 %v907_v23 }
  0xc3   : > { %998 = vmatpush.msra.mxu2 %v927_v58 }
  0xc4   : > { %982 = vmatpush.msra.mxu1 %v905_v24  ;;  %959 = vmatpush.msra.mxu0 %v904_v25  ;;  %s3835_s26 = scalar_lea.vmem %s3834_s14, %s3310_s20 }
  0xc5   : > { %999 = vmatpush.msra.mxu2 %v924_v60 }
  0xc6   : > { %983 = vmatpush.msra.mxu1 %v902_v26  ;;  %960 = vmatpush.msra.mxu0 %v901_v27 }
  0xc7   : > { %1000 = vmatpush.msra.mxu2 %v921_v62 }
  0xc8   : > { %984 = vmatpush.msra.mxu1 %v899_v28  ;;  %961 = vmatpush.msra.mxu0 %v898_v29 }
  0xc9   : > { %1001 = vmatpush.msra.mxu2 %v918_v0 }
  0xca   : > { %985 = vmatpush.msra.mxu1 %v896_v30  ;;  %962 = vmatpush.msra.mxu0 %v895_v31 }
  0xcb   : > { %1002 = vmatpush.msra.mxu2 %v915_v1 }
  0xcc   : > { %986 = vmatpush.msra.mxu1 %v893_v32  ;;  %963 = vmatpush.msra.mxu0 %v892_v33 }
  0xcd   : > { %987 = vmatmul.f32.vlgmr.msra.gmra.mxu1 %v3374_v34  ;;  %964 = vmatmul.f32.vlgmr.msra.gmra.mxu0 %v3374_v34 }
  0xce   : > { %1003 = vmatpush.msra.mxu2 %v912_v2 }
  0xd0   : > { %1004 = vmatpush.msra.mxu2 %v909_v3 }
  0xd2   : > { %1005 = vmatpush.msra.mxu2 %v906_v4 }
  0xd4   : > { %1006 = vmatpush.msra.mxu2 %v903_v5 }
  0xd5   : > { %990 = vmatmul.f32.gmra.mxu1 %v3378_v35  ;;  %967 = vmatmul.f32.gmra.mxu0 %v3378_v35 }
  0xd6   : > { %1007 = vmatpush.msra.mxu2 %v900_v6 }
  0xd8   : > { %1008 = vmatpush.msra.mxu2 %v897_v7 }
  0xda   : > { %1009 = vmatpush.msra.mxu2 %v894_v8 }
  0xdb   : > { %1010 = vmatmul.f32.vlgmr.msra.gmra.mxu2 %v3374_v34 }
  0xe3   : > { %1013 = vmatmul.f32.gmra.mxu2 %v3378_v35 }
 0x14a   : > { %v988_v39 = vpop.f32.mrf.mxu1  ;;  %v965_v40 = vpop.f32.mrf.mxu0 }
 0x14b   : > { %v3387_v41 = vadd.f32 %v988_v39, %v943_v37  ;;  %v966_v42 = vadd.f32 %v965_v40, %v942_v38 }
 0x14d   : > { %v3389_v43 = vmul.f32 0.17677669, %v966_v42  ;;  %1151 = vrot.lane.b32.xlu2 %v3387_v41, %s2920_s2  ;;  %2253 = vmatpush.xpose.msk.msra.mxu3 %vm1027_vm0, %v3387_v41 }
 0x150   : > { %2254 = vmatmul.msk.f32.vlgmr.msra.gmra.mxu3 %vm1027_vm0, %v3389_v43 }
 0x152   : > { %v991_v44 = vpop.f32.mrf.mxu1  ;;  %v968_v45 = vpop.f32.mrf.mxu0 }
 0x153   : > { %v3397_v46 = vadd.f32 %v991_v44, %v943_v37  ;;  %v969_v47 = vadd.f32 %v968_v45, %v942_v38 }
 0x155   : > { %v3399_v48 = vmul.f32 0.17677669, %v969_v47  ;;  %2255 = vmatpush.xpose.msk.msrb.mxu3 %vm1027_vm0, %v3397_v46  ;;  %1149 = vrot.lane.b32.xlu2 %v3389_v43, %s2920_s2 }
 0x158   : > { %2256 = vmatmul.msk.f32.vlgmr.msrb.gmra.mxu3 %vm1027_vm0, %v3399_v48 }
 0x15d   : > { %1283 = vrot.lane.b32.xlu2 %v3387_v41, %s2921_s4 }
 0x15e   : > { %v1011_v20 = vpop.f32.mrf.mxu2 }
 0x15f   : > { %v3444_v21 = vadd.f32 %v1011_v20, %v944_v19 }
 0x161   : > { %1121 = vmatpush.msra.mxu3 %v3444_v21 }
 0x165   : > { %1281 = vrot.lane.b32.xlu2 %v3389_v43, %s2921_s4 }
 0x166   : > { %v1014_v22 = vpop.f32.mrf.mxu2 }
 0x167   : > { %v3451_v23 = vadd.f32 %v1014_v22, %v944_v19 }
 0x169   : > { %1144 = vmatpush.msrb.mxu3 %v3451_v23 }
 0x1a7   : > { %v1152_v25 = vpop.permute.xlu2 %1151 }
 0x1af   : > { %v1150_v30 = vpop.permute.xlu2 %1149 }
 0x1b7   : > { %v1284_v33 = vpop.permute.xlu2 %1283 }
 0x1bf   : > { %v1282_v37 = vpop.permute.xlu2 %1281 }
 0x1d3   : > { %v1051_v50 = vpop.f32.mrf.mxu3 }
 0x1d4   : > { %v1052_v53 = vadd.f32 %v3412_v49, %v1051_v50 }
 0x1d6   : > { %v1081_v55 = vsel %vm1080_vm1, %v1052_v53, -inf }
 0x1d7   : > { %1082 = vmax.xlane.f32.xlu0 %v1081_v55 }
 0x1db   : > { %v1077_v59 = vpop.f32.mrf.mxu3 }
 0x1dc   : > { %v1078_v61 = vadd.f32 %v3421_v57, %v1077_v59 }
 0x1de   : > { %v1084_v63 = vsel %vm1080_vm1, %v1078_v61, -inf }
 0x1df   : > { %1085 = vmax.xlane.f32.xlu0 %v1084_v63 }
 0x1f3   : > { %1179 = vrot.lane.b32.xlu0 %v3397_v46, %s2920_s2 }
 0x24a   : > { %v1083_v9 = vpop.xlane.xlu0 %1082 }
 0x24b   : > { %v1087_v10 = vsub.f32 %v1052_v53, %v1083_v9 }
 0x24d   : > { %v1089_v11 = vmul.f32 1.442695, %v1087_v10 }
 0x24f   : > { %2457 = vpow2.f32 %v1089_v11 }
 0x252   : > { %v1086_v12 = vpop.xlane.xlu0 %1085 }
 0x253   : > { %v1088_v13 = vsub.f32 %v1078_v61, %v1086_v12 }
 0x255   : > { %v2458_v14 = vpop.eup %2457  ;;  %v1091_v15 = vmul.f32 1.442695, %v1088_v13 }
 0x256   : > { %v1093_v16 = vsel %vm1080_vm1, %v2458_v14, 0.0 }
 0x257   : > { %2459 = vpow2.f32 %v1091_v15  ;;  %1094 = vadd.xlane.f32.xlu1 %v1093_v16 }
 0x25d   : > { %v2460_v17 = vpop.eup %2459 }
 0x25e   : > { %v1096_v18 = vsel %vm1080_vm1, %v2460_v17, 0.0 }
 0x25f   : > { %1097 = vadd.xlane.f32.xlu1 %v1096_v18 }
 0x265   : > { %v1180_v32 = vpop.permute.xlu0 %1179 }
 0x278   : > { %1177 = vrot.lane.b32.xlu1 %v3399_v48, %s2920_s2 }
 0x280   : > { %1359 = vrot.lane.b32.xlu1 %v3444_v21, %s2921_s4 }
 0x2ca   : > { %v1095_v24 = vpop.xlane.xlu1 %1094 }
 0x2cb   : > { %2461 = vrcp.f32 %v1095_v24 }
 0x2d1   : > { %v2462_v26 = vpop.eup %2461 }
 0x2d2   : > { %v1101_v27 = vmul.f32 %v2462_v26, %v2458_v14  ;;  %v1098_v28 = vpop.xlane.xlu1 %1097 }
 0x2d3   : > { %2463 = vrcp.f32 %v1098_v28 }
 0x2d4   : > { %2257 = vmatmul.msk.f32.vlgmr.msra.gmra.mxu3 %vm1080_vm1, %v1101_v27 }
 0x2d5   : > { %2259 = vmatpush.xpose.msk.msra.mxu3 %vm1027_vm0, %v1152_v25 }
 0x2d9   : > { %v2464_v29 = vpop.eup %2463 }
 0x2da   : > { %v1102_v31 = vmul.f32 %v2464_v29, %v2460_v17 }
 0x2dc   : > { %2258 = vmatmul.msk.f32.vlgmr.msrb.gmra.mxu3 %vm1080_vm1, %v1102_v31 }
 0x2dd   : > { %2261 = vmatpush.xpose.msk.msrb.mxu3 %vm1027_vm0, %v1180_v32 }
 0x2e4   : > { %2260 = vmatmul.msk.f32.vlgmr.msra.gmra.mxu3 %vm1027_vm0, %v1150_v30 }
 0x2e5   : > { %2265 = vmatpush.xpose.msk.msra.mxu3 %vm1027_vm0, %v1284_v33 }
 0x2ea   : > { %v1178_v36 = vpop.permute.xlu1 %1177 }
 0x2ec   : > { %2262 = vmatmul.msk.f32.vlgmr.msrb.gmra.mxu3 %vm1027_vm0, %v1178_v36 }
 0x2f2   : > { %v1360_v1 = vpop.permute.xlu1 %1359 }
 0x2f4   : > { %2266 = vmatmul.msk.f32.vlgmr.msra.gmra.mxu3 %vm1027_vm0, %v1282_v37 }
 0x357   : > { %v3462_v38 = vpop.f32.mrf.mxu3 }
 0x35f   : > { %v3464_v39 = vpop.f32.mrf.mxu3 }
 0x367   : > { %v1174_v40 = vpop.f32.mrf.mxu3 }
 0x368   : > { %v1175_v42 = vadd.f32 %v3412_v49, %v1174_v40 }
 0x36a   : > { %v1205_v44 = vsel %vm1080_vm1, %v1175_v42, -inf }
 0x36b   : > { %1206 = vmax.xlane.f32.xlu2 %v1205_v44 }
 0x36f   : > { %v1202_v45 = vpop.f32.mrf.mxu3 }
 0x370   : > { %v1203_v52 = vadd.f32 %v3421_v57, %v1202_v45 }
 0x372   : > { %v1208_v53 = vsel %vm1080_vm1, %v1203_v52, -inf }
 0x377   : > { %v1306_v47 = vpop.f32.mrf.mxu3 }
 0x378   : > { %v1307_v50 = vadd.f32 %v3412_v49, %v1306_v47 }
 0x37a   : > { %v1337_v51 = vsel %vm1080_vm1, %v1307_v50, -inf }
 0x37b   : > { %1338 = vmax.xlane.f32.xlu0 %v1337_v51 }
 0x383   : > { %1311 = vrot.lane.b32.xlu2 %v3397_v46, %s2921_s4 }
 0x38b   : > { %1413 = vrot.lane.b32.xlu2 %v3387_v41, %s2922_s8 }
 0x38f   : > { %1228 = vrot.lane.b32.xlu0 %v3444_v21, %s2920_s2 }
 0x397   : > { %1309 = vrot.lane.b32.xlu0 %v3399_v48, %s2921_s4 }
 0x39f   : > { %1441 = vrot.lane.b32.xlu0 %v3397_v46, %s2922_s8 }
 0x3c9   : > { %1209 = vmax.xlane.f32.xlu0 %v1208_v53 }
 0x3de   : > { %v1207_v54 = vpop.xlane.xlu2 %1206 }
 0x3df   : > { %v1211_v55 = vsub.f32 %v1175_v42, %v1207_v54 }
 0x3e1   : > { %v1213_v56 = vmul.f32 1.442695, %v1211_v55 }
 0x3e3   : > { %2465 = vpow2.f32 %v1213_v56 }
 0x3e6   : > { %v1312_v58 = vpop.permute.xlu2 %1311 }
 0x3e7   : > { %2267 = vmatpush.xpose.msk.msrb.mxu3 %vm1027_vm0, %v1312_v58 }
 0x3e9   : > { %v2466_v41 = vpop.eup %2465 }
 0x3ea   : > { %v1217_v59 = vsel %vm1080_vm1, %v2466_v41, 0.0 }
 0x3eb   : > { %1218 = vadd.xlane.f32.xlu1 %v1217_v59 }
 0x3ee   : > { %v1339_v60 = vpop.xlane.xlu0 %1338  ;;  %v1414_v6 = vpop.permute.xlu2 %1413 }
 0x3ef   : > { %v1343_v61 = vsub.f32 %v1307_v50, %v1339_v60 }
 0x3f1   : > { %v1345_v62 = vmul.f32 1.442695, %v1343_v61 }
 0x3f3   : > { %2467 = vpow2.f32 %v1345_v62 }
 0x3f9   : > { %v2468_v46 = vpop.eup %2467 }
 0x3fa   : > { %v1349_v63 = vsel %vm1080_vm1, %v2468_v46, 0.0 }
 0x3fb   : > { %1350 = vadd.xlane.f32.xlu2 %v1349_v63 }
 0x401   : > { %v1229_v0 = vpop.permute.xlu0 %1228 }
 0x402   : > { %1249 = vmatpush.msrb.mxu0 %v1229_v0 }
 0x404   : > { %1380 = vmatpush.msra.mxu0 %v1360_v1  ;;  %1411 = vrot.lane.b32.xlu1 %v3389_v43, %s2922_s8  ;;  %v1588_v1 = vld [vmem:[%s3293_s7 + $0x78] sm:$0xff] }
 0x405   : > { %1593 = vmatpush.msrb.mxu2 %v1588_v1  ;;  %v1698_v1 = vld [vmem:[%s3295_s6 + $0xa8] sm:$0xff] }
 0x409   : > { %v1310_v2 = vpop.permute.xlu0 %1309 }
 0x40a   : > { %2268 = vmatmul.msk.f32.vlgmr.msrb.gmra.mxu3 %vm1027_vm0, %v1310_v2  ;;  %v1587_v2 = vld [vmem:[%s3293_s7 + $0x70] sm:$0xff] }
 0x40b   : > { %1594 = vmatpush.msrb.mxu2 %v1587_v2  ;;  %v1695_v2 = vld [vmem:[%s3295_s6 + $0x90] sm:$0xff] }
 0x411   : > { %v1442_v3 = vpop.permute.xlu0 %1441 }
 0x412   : > { %2273 = vmatpush.xpose.msk.msra.mxu3 %vm1027_vm0, %v1442_v3  ;;  %v1586_v3 = vld [vmem:[%s3293_s7 + $0x68] sm:$0xff] }
 0x413   : > { %1439 = vrot.lane.b32.xlu2 %v3399_v48, %s2922_s8  ;;  %1595 = vmatpush.msrb.mxu2 %v1586_v3  ;;  %v1696_v3 = vld [vmem:[%s3295_s6 + $0x98] sm:$0xff] }
 0x43c   : > { %v1210_v48 = vpop.xlane.xlu0 %1209 }
 0x43d   : > { %v1212_v12 = vsub.f32 %v1203_v52, %v1210_v48  ;;  %v1577_v48 = vld [vmem:[%s3293_s7 + $0x20] sm:$0xff] }
 0x43f   : > { %v1215_v13 = vmul.f32 1.442695, %v1212_v12  ;;  %v1576_v12 = vld [vmem:[%s3293_s7 + $0x18] sm:$0xff] }
 0x45e   : > { %v1219_v4 = vpop.xlane.xlu1 %1218 }
 0x45f   : > { %2469 = vrcp.f32 %v1219_v4  ;;  %v1585_v4 = vld [vmem:[%s3293_s7 + $0x60] sm:$0xff] }
 0x460   : > { %1596 = vmatpush.msrb.mxu2 %v1585_v4  ;;  %v1693_v4 = vld [vmem:[%s3295_s6 + $0x80] sm:$0xff] }
 0x465   : > { %v2470_v5 = vpop.eup %2469 }
 0x466   : > { %v1225_v7 = vmul.f32 %v2470_v5, %v2466_v41  ;;  %v1584_v5 = vld [vmem:[%s3293_s7 + $0x58] sm:$0xff] }
 0x467   : > { %1597 = vmatpush.msrb.mxu2 %v1584_v5  ;;  %v1694_v5 = vld [vmem:[%s3295_s6 + $0x88] sm:$0xff] }
 0x468   : > { %2263 = vmatmul.msk.f32.vlgmr.msrb.gmra.mxu0 %vm1080_vm1, %v1225_v7  ;;  %v1582_v7 = vld [vmem:[%s3293_s7 + $0x48] sm:$0xff] }
 0x469   : > { %2271 = vmatpush.xpose.msk.msrb.mxu0 %vm1027_vm0, %v1414_v6  ;;  %v1583_v6 = vld [vmem:[%s3293_s7 + $0x50] sm:$0xff] }
 0x46a   : > { %1598 = vmatpush.msrb.mxu2 %v1583_v6  ;;  %v1691_v6 = vld [vmem:[%s3295_s6 + $0x70] sm:$0xff] }
 0x46c   : > { %1599 = vmatpush.msrb.mxu2 %v1582_v7  ;;  %v1692_v7 = vld [vmem:[%s3295_s6 + $0x78] sm:$0xff] }
 0x46e   : > { %v1351_v8 = vpop.xlane.xlu2 %1350 }
 0x46f   : > { %2471 = vrcp.f32 %v1351_v8 }
 0x470   : > { %2473 = vpow2.f32 %v1215_v13 }
 0x475   : > { %v2472_v43 = vpop.eup %2471 }
 0x476   : > { %v1357_v9 = vmul.f32 %v2472_v43, %v2468_v46  ;;  %v1440_v10 = vpop.permute.xlu2 %1439  ;;  %v1412_v11 = vpop.permute.xlu1 %1411  ;;  %v1581_v43 = vld [vmem:[%s3293_s7 + $0x40] sm:$0xff] }
 0x477   : > { %2274 = vmatmul.msk.f32.vlgmr.msra.gmra.mxu3 %vm1027_vm0, %v1440_v10  ;;  %v2474_v17 = vpop.eup %2473  ;;  %1600 = vmatpush.msrb.mxu2 %v1581_v43  ;;  %v1579_v10 = vld [vmem:[%s3293_s7 + $0x30] sm:$0xff]  ;;  %v1690_v43 = vld [vmem:[%s3295_s6 + $0x68] sm:$0xff] }
 0x478   : > { %2269 = vmatmul.msk.f32.vlgmr.msra.gmra.mxu0 %vm1080_vm1, %v1357_v9  ;;  %v1220_v18 = vsel %vm1080_vm1, %v2474_v17, 0.0  ;;  %v1580_v9 = vld [vmem:[%s3293_s7 + $0x38] sm:$0xff] }
 0x479   : > { %1601 = vmatpush.msrb.mxu2 %v1580_v9  ;;  %v1687_v9 = vld [vmem:[%s3295_s6 + $0x50] sm:$0xff] }
 0x47b   : > { %1602 = vmatpush.msrb.mxu2 %v1579_v10  ;;  %v1688_v10 = vld [vmem:[%s3295_s6 + $0x58] sm:$0xff] }
 0x480   : > { %2272 = vmatmul.msk.f32.vlgmr.msrb.gmra.mxu0 %vm1027_vm0, %v1412_v11  ;;  %v1578_v11 = vld [vmem:[%s3293_s7 + $0x28] sm:$0xff] }
 0x481   : > { %1603 = vmatpush.msrb.mxu2 %v1578_v11  ;;  %v1685_v11 = vld [vmem:[%s3295_s6 + $0x40] sm:$0xff] }
 0x483   : > { %1604 = vmatpush.msrb.mxu2 %v1577_v48  ;;  %v1686_v48 = vld [vmem:[%s3295_s6 + $0x48] sm:$0xff] }
 0x485   : > { %1605 = vmatpush.msrb.mxu2 %v1576_v12  ;;  %v1683_v12 = vld [vmem:[%s3295_s6 + $0x30] sm:$0xff] }
 0x48d   : > { %v1334_v14 = vpop.f32.mrf.mxu3 }
 0x48e   : > { %v1335_v15 = vadd.f32 %v3421_v57, %v1334_v14  ;;  %v1575_v14 = vld [vmem:[%s3293_s7 + $0x10] sm:$0xff] }
 0x48f   : > { %1606 = vmatpush.msrb.mxu2 %v1575_v14  ;;  %v1681_v14 = vld [vmem:[%s3295_s6 + $0x20] sm:$0xff] }
 0x490   : > { %v1340_v16 = vsel %vm1080_vm1, %v1335_v15, -inf }
 0x491   : > { %1341 = vmax.xlane.f32.xlu1 %v1340_v16 }
 0x499   : > { %1221 = vadd.xlane.f32.xlu1 %v1220_v18 }
 0x4b2   : > { %1255 = vrot.lane.b32.xlu1 %v3451_v23, %s2920_s2 }
 0x4ba   : > { %1515 = vrot.lane.b32.xlu1 %v3451_v23, %s2922_s8 }
 0x4e5   : > { %v1251_v19 = vpop.f32.mrf.mxu0 }
 0x4f5   : > { %v1382_v20 = vpop.f32.mrf.mxu0 }
 0x4f6   : > { %1551 = vrot.lane.b32.xlu1 %v1382_v20, %s2921_s4 }
 0x4fa   : > { %v1464_v22 = vpop.f32.mrf.mxu3 }
 0x4fb   : > { %v1465_v24 = vadd.f32 %v3421_v57, %v1464_v22 }
 0x4fd   : > { %v1436_v25 = vpop.f32.mrf.mxu0  ;;  %v1470_v26 = vsel %vm1080_vm1, %v1465_v24, -inf }
 0x4fe   : > { %v1437_v27 = vadd.f32 %v3412_v49, %v1436_v25  ;;  %1471 = vmax.xlane.f32.xlu0 %v1470_v26 }
 0x500   : > { %v1467_v28 = vsel %vm1080_vm1, %v1437_v27, -inf }
 0x501   : > { %1468 = vmax.xlane.f32.xlu2 %v1467_v28 }
 0x504   : > { %v1342_v29 = vpop.xlane.xlu1 %1341 }
 0x505   : > { %v1344_v30 = vsub.f32 %v1335_v15, %v1342_v29  ;;  %v1574_v15 = vld [vmem:[%s3293_s7 + $0x8] sm:$0xff] }
 0x506   : > { %1607 = vmatpush.msrb.mxu2 %v1574_v15  ;;  %v1682_v15 = vld [vmem:[%s3295_s6 + $0x28] sm:$0xff] }
 0x507   : > { %v1347_v31 = vmul.f32 1.442695, %v1344_v30 }
 0x509   : > { %2475 = vpow2.f32 %v1347_v31 }
 0x50c   : > { %v1222_v36 = vpop.xlane.xlu1 %1221 }
 0x50d   : > { %2477 = vrcp.f32 %v1222_v36 }
 0x50f   : > { %v2476_v32 = vpop.eup %2475 }
 0x510   : > { %v1352_v33 = vsel %vm1080_vm1, %v2476_v32, 0.0 }
 0x511   : > { %1353 = vadd.xlane.f32.xlu2 %v1352_v33 }
 0x513   : > { %v2478_v57 = vpop.eup %2477 }
 0x514   : > { %v1226_v40 = vmul.f32 %v2478_v57, %v2474_v17  ;;  %v1573_v17 = vld [vmem:[%s3293_s7] sm:$0xff]  ;;  %s3836_s7 = scalar_lea.vmem [#allocation15], %s3275_s30 }
 0x515   : > { %1608 = vmatpush.msrb.mxu2 %v1573_v17  ;;  %v1680_v17 = vld [vmem:[%s3295_s6 + $0x18] sm:$0xff] }
 0x524   : > { %v1256_v37 = vpop.permute.xlu1 %1255 }
 0x525   : > { %1276 = vmatpush.msrb.mxu1 %v1256_v37 }
 0x526   : > { %2264 = vmatmul.msk.f32.vlgmr.msrb.gmra.mxu1 %vm1080_vm1, %v1226_v40  ;;  %v2923_v40 = vmov 128.0  }
 0x52c   : > { %v1516_v46 = vpop.permute.xlu1 %1515 }
 0x568   : > { %v1552_v20 = vpop.permute.xlu1 %1551 }
 0x571   : > { %v1472_v49 = vpop.xlane.xlu0 %1471 }
 0x572   : > { %v1474_v42 = vsub.f32 %v1465_v24, %v1472_v49 }
 0x574   : > { %v1477_v44 = vmul.f32 1.442695, %v1474_v42  ;;  %v1469_v45 = vpop.xlane.xlu2 %1468 }
 0x575   : > { %v1473_v47 = vsub.f32 %v1437_v27, %v1469_v45 }
 0x576   : > { %2479 = vpow2.f32 %v1477_v44 }
 0x577   : > { %v1475_v50 = vmul.f32 1.442695, %v1473_v47 }
 0x579   : > { %2481 = vpow2.f32 %v1475_v50  ;;  %v1707_v50 = vld [vmem:[%s3295_s6 + $0xf0] sm:$0xff] }
 0x57a   : > { %1715 = vmatpush.msrb.mxu3 %v1707_v50 }
 0x57c   : > { %v2480_v51 = vpop.eup %2479 }
 0x57d   : > { %v1482_v52 = vsel %vm1080_vm1, %v2480_v51, 0.0 }
 0x57e   : > { %1483 = vadd.xlane.f32.xlu2 %v1482_v52  ;;  %v1705_v52 = vld [vmem:[%s3295_s6 + $0xe0] sm:$0xff] }
 0x57f   : > { %v2482_v53 = vpop.eup %2481  ;;  %1716 = vmatpush.msrb.mxu3 %v1705_v52  ;;  %v1776_v52 = vld [vmem:[%s3301_s19 + $0x58] sm:$0xff] }
 0x580   : > { %v1479_v54 = vsel %vm1080_vm1, %v2482_v53, 0.0 }
 0x581   : > { %1480 = vadd.xlane.f32.xlu0 %v1479_v54 }
 0x584   : > { %v1354_v56 = vpop.xlane.xlu2 %1353 }
 0x595   : > { %1385 = vrot.lane.b32.xlu0 %v3451_v23, %s2921_s4 }
 0x596   : > { %1489 = vrot.lane.b32.xlu2 %v3444_v21, %s2922_s8 }
 0x59d   : > { %1543 = vrot.lane.b32.xlu0 %v1251_v19, %s2922_s8 }
 0x5a3   : > { %v1278_v55 = vpop.f32.mrf.mxu1 }
 0x5a4   : > { %1545 = vrot.lane.b32.xlu2 %v1278_v55, %s2922_s8 }
 0x5f1   : > { %v1484_v58 = vpop.xlane.xlu2 %1483 }
 0x5f4   : > { %v1481_v41 = vpop.xlane.xlu0 %1480 }
 0x5f5   : > { %2483 = vrcp.f32 %v1481_v41 }
 0x5f6   : > { %2485 = vrcp.f32 %v1354_v56 }
 0x5f7   : > { %2487 = vrcp.f32 %v1484_v58 }
 0x5f8   : > { %2489 = vrcp.f32 %v2923_v40  ;;  %v1793_v40 = vld [vmem:[%s3301_s19 + $0xe0] sm:$0xff] }
 0x5f9   : > { %v1490_v59 = vpop.permute.xlu2 %1489 }
 0x5fa   : > { %1510 = vmatpush.msra.mxu0 %v1490_v59 }
 0x5fb   : > { %v2484_v60 = vpop.eup %2483 }
 0x5fc   : > { %v1487_v61 = vmul.f32 %v2484_v60, %v2482_v53  ;;  %v2486_v21 = vpop.eup %2485 }
 0x5fd   : > { %v1358_v23 = vmul.f32 %v2486_v21, %v2476_v32  ;;  %v2488_v63 = vpop.eup %2487  ;;  %v1704_v21 = vld [vmem:[%s3295_s6 + $0xd8] sm:$0xff] }
 0x5fe   : > { %2275 = vmatmul.msk.f32.vlgmr.msra.gmra.mxu0 %vm1080_vm1, %v1487_v61  ;;  %v1488_v0 = vmul.f32 %v2488_v63, %v2480_v51  ;;  %v2490_v49 = vpop.eup %2489  ;;  %v1708_v51 = vld [vmem:[%s3295_s6 + $0xf8] sm:$0xff]  ;;  %v1703_v61 = vld [vmem:[%s3295_s6 + $0xd0] sm:$0xff] }
 0x5ff   : > { %v1625_v42 = vmul.f32 128.0, %v2490_v49  ;;  %vm1629_vm4 = vweird.f32 %v2490_v49  ;;  %1738 = vmatpush.msrb.mxu0 %v1708_v51  ;;  %1717 = vmatpush.msrb.mxu3 %v1703_v61  ;;  %v1700_v63 = vld [vmem:[%s3295_s6 + $0xb8] sm:$0xff]  ;;  %v2453_v51 = vld [vmem:[%s877_s10] ss:$0 sm:$0xff] }
 0x601   : > { %v1546_v26 = vpop.permute.xlu2 %1545  ;;  %v1626_v44 = vsub.f32 1.0, %v1625_v42  ;;  %v1777_v42 = vld [vmem:[%s3301_s19 + $0x60] sm:$0xff] }
 0x602   : > { %v1566_v28 = vsel %vm1027_vm0, %v3464_v39, %v1546_v26 }
 0x603   : > { %v1627_v45 = vmul.f32 %v2490_v49, %v1626_v44 }
 0x605   : > { %v1628_v47 = vadd.f32 %v2490_v49, %v1627_v45 }
 0x607   : > { %v1386_v62 = vpop.permute.xlu0 %1385 }
 0x608   : > { %1406 = vmatpush.msra.mxu1 %v1386_v62  ;;  %v1702_v62 = vld [vmem:[%s3295_s6 + $0xc8] sm:$0xff] }
 0x609   : > { %2270 = vmatmul.msk.f32.vlgmr.msra.gmra.mxu1 %vm1080_vm1, %v1358_v23  ;;  %v1701_v23 = vld [vmem:[%s3295_s6 + $0xc0] sm:$0xff] }
 0x60a   : > { %1536 = vmatpush.msrb.mxu1 %v1516_v46  ;;  %1718 = vmatpush.msrb.mxu3 %v1701_v23  ;;  %v1699_v46 = vld [vmem:[%s3295_s6 + $0xb0] sm:$0xff]  ;;  %v1788_v23 = vld [vmem:[%s3301_s19 + $0xb8] sm:$0xff] }
 0x60c   : > { %1719 = vmatpush.msrb.mxu3 %v1699_v46 }
 0x60f   : > { %v1544_v18 = vpop.permute.xlu0 %1543 }
 0x610   : > { %v1565_v19 = vsel %vm1027_vm0, %v3462_v38, %v1544_v18  ;;  %v2451_v38 = vld [vmem:[%s3835_s26] ss:$0 sm:$0xff] }
 0x611   : > { %2276 = vmatmul.msk.f32.vlgmr.msrb.gmra.mxu1 %vm1080_vm1, %v1488_v0  ;;  %v1568_v24 = vsel %vm1567_vm2, %v1565_v19, %v1552_v20  ;;  %v1697_v0 = vld [vmem:[%s3295_s6 + $0xa0] sm:$0xff]  ;;  %v1678_v19 = vld [vmem:[%s3295_s6 + $0x8] sm:$0xff] }
 0x612   : > { %1720 = vmatpush.msrb.mxu3 %v1697_v0  ;;  %v1677_v18 = vld [vmem:[%s3295_s6] sm:$0xff]  ;;  %v1771_v0 = vld [vmem:[%s3301_s19 + $0x30] sm:$0xff] }
 0x614   : > { %1721 = vmatpush.msrb.mxu3 %v1695_v2  ;;  %v1786_v2 = vld [vmem:[%s3301_s19 + $0xa8] sm:$0xff] }
 0x616   : > { %1722 = vmatpush.msrb.mxu3 %v1693_v4  ;;  %v1785_v4 = vld [vmem:[%s3301_s19 + $0xa0] sm:$0xff] }
 0x618   : > { %1723 = vmatpush.msrb.mxu3 %v1691_v6  ;;  %v1784_v6 = vld [vmem:[%s3301_s19 + $0x98] sm:$0xff] }
 0x67b   : > { %v1512_v8 = vpop.f32.mrf.mxu0 }
 0x67c   : > { %1559 = vrot.lane.b32.xlu0 %v1512_v8, %s2920_s2  ;;  %v1689_v8 = vld [vmem:[%s3295_s6 + $0x60] sm:$0xff] }
 0x67d   : > { %1724 = vmatpush.msrb.mxu3 %v1689_v8 }
 0x67f   : > { %1725 = vmatpush.msrb.mxu3 %v1687_v9 }
 0x681   : > { %1726 = vmatpush.msrb.mxu3 %v1685_v11  ;;  %v1783_v11 = vld [vmem:[%s3301_s19 + $0x90] sm:$0xff] }
 0x683   : > { %1727 = vmatpush.msrb.mxu3 %v1683_v12  ;;  %v1782_v12 = vld [vmem:[%s3301_s19 + $0x88] sm:$0xff] }
 0x685   : > { %1728 = vmatpush.msrb.mxu3 %v1681_v14  ;;  %v1781_v14 = vld [vmem:[%s3301_s19 + $0x80] sm:$0xff] }
 0x686   : > { %v1408_v13 = vpop.f32.mrf.mxu1 }
 0x687   : > { %1553 = vrot.lane.b32.xlu1 %v1408_v13, %s2921_s4  ;;  %v1684_v13 = vld [vmem:[%s3295_s6 + $0x38] sm:$0xff] }
 0x68e   : > { %v1538_v16 = vpop.f32.mrf.mxu1 }
 0x68f   : > { %1561 = vrot.lane.b32.xlu0 %v1538_v16, %s2920_s2  ;;  %v1679_v16 = vld [vmem:[%s3295_s6 + $0x10] sm:$0xff] }
 0x690   : > { %1729 = vmatpush.msrb.mxu3 %v1679_v16  ;;  %v1765_v16 = vld [vmem:[%s3301_s19] sm:$0xff] }
 0x692   : > { %1730 = vmatpush.msrb.mxu3 %v1677_v18 }
 0x6ee   : > { %v1560_v22 = vpop.permute.xlu0 %1559 }
 0x6ef   : > { %v1571_v25 = vsel %vm1570_vm3, %v1568_v24, %v1560_v22 }
 0x6f0   : > { %1609 = vmatmul.f32.vlgmr.msrb.gmra.mxu2 %v1571_v25 }
 0x6f9   : > { %v1554_v27 = vpop.permute.xlu1 %1553 }
 0x6fa   : > { %v1569_v29 = vsel %vm1567_vm2, %v1566_v28, %v1554_v27 }
 0x701   : > { %v1562_v30 = vpop.permute.xlu0 %1561 }
 0x702   : > { %v1572_v31 = vsel %vm1570_vm3, %v1569_v29, %v1562_v30  ;;  %v1796_v29 = vld [vmem:[%s3301_s19 + $0xf8] sm:$0xff]  ;;  %v1795_v30 = vld [vmem:[%s3301_s19 + $0xf0] sm:$0xff] }
 0x703   : > { %1612 = vmatmul.f32.gmra.mxu2 %v1572_v31  ;;  %v1780_v31 = vld [vmem:[%s3301_s19 + $0x78] sm:$0xff] }
 0x704   : > { %1824 = vmatpush.msra.mxu2 %v1796_v29  ;;  %1801 = vmatpush.msra.mxu1 %v1780_v31 }
 0x706   : > { %1825 = vmatpush.msra.mxu2 %v1795_v30 }
 0x773   : > { %v1610_v32 = vpop.f32.mrf.mxu2 }
 0x774   : > { %v1611_v33 = vadd.f32 %v2451_v38, %v1610_v32 }
 0x776   : > { %v1616_v36 = vadd.f32 %v1611_v33, %v3374_v34  ;;  %v1706_v34 = vld [vmem:[%s3295_s6 + $0xe8] sm:$0xff] }
 0x777   : > { %1739 = vmatpush.msrb.mxu0 %v1706_v34  ;;  %v1794_v33 = vld [vmem:[%s3301_s19 + $0xe8] sm:$0xff]  ;;  %v1791_v34 = vld [vmem:[%s3301_s19 + $0xd0] sm:$0xff] }
 0x778   : > { %1620 = vadd.xlane.f32.xlu2 %v1616_v36  ;;  %1826 = vmatpush.msra.mxu2 %v1794_v33  ;;  %v2454_v33 = vld [vmem:[%s874_s0] ss:$0 sm:$0xff] }
 0x779   : > { %1740 = vmatpush.msrb.mxu0 %v1704_v21 }
 0x77a   : > { %1827 = vmatpush.msra.mxu2 %v1793_v40 }
 0x77b   : > { %1741 = vmatpush.msrb.mxu0 %v1702_v62  ;;  %v1772_v62 = vld [vmem:[%s3301_s19 + $0x38] sm:$0xff] }
 0x77d   : > { %1742 = vmatpush.msrb.mxu0 %v1700_v63  ;;  %v1787_v63 = vld [vmem:[%s3301_s19 + $0xb0] sm:$0xff] }
 0x77f   : > { %1743 = vmatpush.msrb.mxu0 %v1698_v1 }
 0x781   : > { %1744 = vmatpush.msrb.mxu0 %v1696_v3 }
 0x783   : > { %1745 = vmatpush.msrb.mxu0 %v1694_v5 }
 0x785   : > { %1746 = vmatpush.msrb.mxu0 %v1692_v7 }
 0x786   : > { %v1613_v57 = vpop.f32.mrf.mxu2 }
 0x787   : > { %v1614_v37 = vadd.f32 %v2451_v38, %v1613_v57  ;;  %1747 = vmatpush.msrb.mxu0 %v1690_v43  ;;  %v1779_v38 = vld [vmem:[%s3301_s19 + $0x70] sm:$0xff]  ;;  %v1778_v57 = vld [vmem:[%s3301_s19 + $0x68] sm:$0xff] }
 0x788   : > { %1802 = vmatpush.msra.mxu1 %v1779_v38 }
 0x789   : > { %v1617_v39 = vadd.f32 %v1614_v37, %v3378_v35  ;;  %v3555_v35 = vsel %vm1629_vm4, %v2490_v49, %v1628_v47  ;;  %1748 = vmatpush.msrb.mxu0 %v1688_v10  ;;  %v2452_v49 = vld [vmem:[%s3836_s7] ss:$0 sm:$0xff]  ;;  %v1792_v47 = vld [vmem:[%s3301_s19 + $0xd8] sm:$0xff]  ;;  %v1770_v10 = vld [vmem:[%s3301_s19 + $0x28] sm:$0xff] }
 0x78a   : > { %1803 = vmatpush.msra.mxu1 %v1778_v57  ;;  %1828 = vmatpush.msra.mxu2 %v1792_v47 }
 0x78b   : > { %1622 = vadd.xlane.f32.xlu1 %v1617_v39  ;;  %1749 = vmatpush.msrb.mxu0 %v1686_v48  ;;  %v1769_v48 = vld [vmem:[%s3301_s19 + $0x20] sm:$0xff] }
 0x78c   : > { %1804 = vmatpush.msra.mxu1 %v1777_v42  ;;  %1829 = vmatpush.msra.mxu2 %v1791_v34 }
 0x78d   : > { %1750 = vmatpush.msrb.mxu0 %v1684_v13  ;;  %v1768_v13 = vld [vmem:[%s3301_s19 + $0x18] sm:$0xff] }
 0x78e   : > { %1805 = vmatpush.msra.mxu1 %v1776_v52 }
 0x78f   : > { %1751 = vmatpush.msrb.mxu0 %v1682_v15  ;;  %v1766_v15 = vld [vmem:[%s3301_s19 + $0x8] sm:$0xff] }
 0x791   : > { %1752 = vmatpush.msrb.mxu0 %v1680_v17  ;;  %v1709_v17 = vld [vmem:[%s3320_s3] sm:$0x3] }
 0x792   : > { %v1712_v18 = vperm.slane %v1709_v17, 1 }
 0x793   : > { %1753 = vmatpush.msrb.mxu0 %v1678_v19 }
 0x7eb   : > { %v1621_v53 = vpop.xlane.xlu2 %1620 }
 0x7ec   : > { %v1631_v54 = vmul.f32 %v3555_v35, %v1621_v53 }
 0x7ee   : > { %v3558_v55 = vsub.f32 %v1616_v36, %v1631_v54  ;;  %v1775_v54 = vld [vmem:[%s3301_s19 + $0x50] sm:$0xff] }
 0x7ef   : > { %1806 = vmatpush.msra.mxu1 %v1775_v54 }
 0x7f0   : > { %v1635_v56 = vmul.f32 %v3558_v55, %v3558_v55 }
 0x7f2   : > { %1637 = vadd.xlane.f32.xlu0 %v1635_v56 }
 0x7fe   : > { %v1623_v58 = vpop.xlane.xlu1 %1622 }
 0x7ff   : > { %v1632_v41 = vmul.f32 %v3555_v35, %v1623_v58  ;;  %v1774_v58 = vld [vmem:[%s3301_s19 + $0x48] sm:$0xff] }
 0x800   : > { %1807 = vmatpush.msra.mxu1 %v1774_v58 }
 0x801   : > { %v3563_v59 = vsub.f32 %v1617_v39, %v1632_v41  ;;  %v1789_v41 = vld [vmem:[%s3301_s19 + $0xc0] sm:$0xff] }
 0x803   : > { %v1636_v60 = vmul.f32 %v3563_v59, %v3563_v59 }
 0x805   : > { %1639 = vadd.xlane.f32.xlu2 %v1636_v60  ;;  %v1773_v60 = vld [vmem:[%s3301_s19 + $0x40] sm:$0xff] }
 0x806   : > { %1808 = vmatpush.msra.mxu1 %v1773_v60 }
 0x808   : > { %1809 = vmatpush.msra.mxu1 %v1772_v62 }
 0x80a   : > { %1810 = vmatpush.msra.mxu1 %v1771_v0 }
 0x80c   : > { %1811 = vmatpush.msra.mxu1 %v1770_v10 }
 0x80e   : > { %1812 = vmatpush.msra.mxu1 %v1769_v48 }
 0x810   : > { %1813 = vmatpush.msra.mxu1 %v1768_v13 }
 0x865   : > { %v1638_v20 = vpop.xlane.xlu0 %1637 }
 0x866   : > { %v1641_v22 = vmul.f32 %v1638_v20, %v3555_v35 }
 0x868   : > { %v1643_v24 = vadd.f32 1e-05, %v1641_v22 }
 0x86a   : > { %2491 = vrsqrt.f32 %v1643_v24  ;;  %vm1651_vm6 = vweird.f32 %v1643_v24 }
 0x870   : > { %v2492_v25 = vpop.eup %2491 }
 0x871   : > { %v1646_v26 = vmul.f32 %v2492_v25, %v1643_v24  ;;  %vm1652_vm5 = vweird.f32 %v2492_v25  ;;  %v1711_v24 = vperm.slane %v1709_v17, 0 }
 0x872   : > { %vm1653_vm7 = vmor %vm1651_vm6, %vm1652_vm5 }
 0x873   : > { %v1647_v27 = vmul.f32 %v2492_v25, %v1646_v26 }
 0x875   : > { %v1648_v28 = vmul.f32 0.5, %v1647_v27 }
 0x877   : > { %v1649_v32 = vsub.f32 1.5, %v1648_v28 }
 0x878   : > { %v1640_v36 = vpop.xlane.xlu2 %1639 }
 0x879   : > { %v1650_v37 = vmul.f32 %v2492_v25, %v1649_v32  ;;  %v1642_v39 = vmul.f32 %v1640_v36, %v3555_v35 }
 0x87b   : > { %v1654_v44 = vsel %vm1653_vm7, %v2492_v25, %v1650_v37  ;;  %v1644_v45 = vadd.f32 1e-05, %v1642_v39 }
 0x87c   : > { %v1665_v50 = vmul.f32 %v1654_v44, %v3558_v55  ;;  %v1790_v55 = vld [vmem:[%s3301_s19 + $0xc8] sm:$0xff] }
 0x87d   : > { %2493 = vrsqrt.f32 %v1644_v45  ;;  %1830 = vmatpush.msra.mxu2 %v1790_v55  ;;  %vm1661_vm9 = vweird.f32 %v1644_v45 }
 0x87e   : > { %v1670_v53 = vmul.f32 %v2452_v49, %v1665_v50 }
 0x87f   : > { %1831 = vmatpush.msra.mxu2 %v1789_v41 }
 0x880   : > { %v3617_v56 = vadd.f32 %v2453_v51, %v1670_v53 }
 0x881   : > { %1832 = vmatpush.msra.mxu2 %v1788_v23 }
 0x882   : > { %1731 = vmatmul.f32.vlgmr.msrb.gmra.mxu3 %v3617_v56  ;;  %1754 = vmatmul.f32.vlgmr.msrb.gmra.mxu0 %v3617_v56 }
 0x883   : > { %v2494_v61 = vpop.eup %2493  ;;  %1833 = vmatpush.msra.mxu2 %v1787_v63 }
 0x884   : > { %v1656_v21 = vmul.f32 %v2494_v61, %v1644_v45  ;;  %vm1662_vm8 = vweird.f32 %v2494_v61 }
 0x885   : > { %1834 = vmatpush.msra.mxu2 %v1786_v2  ;;  %vm1663_vm10 = vmor %vm1661_vm9, %vm1662_vm8  ;;  %v2455_v2 = vld [vmem:[%s763_s21] ss:$0 sm:$0xff]  ;;  %s3840_s21 = sld [smem:[#allocation31_spill]] }
 0x886   : > { %v1657_v46 = vmul.f32 %v2494_v61, %v1656_v21 }
 0x887   : > { %1835 = vmatpush.msra.mxu2 %v1785_v4 }
 0x888   : > { %v1658_v1 = vmul.f32 0.5, %v1657_v46 }
 0x889   : > { %1836 = vmatpush.msra.mxu2 %v1784_v6 }
 0x88a   : > { %v1659_v3 = vsub.f32 1.5, %v1658_v1 }
 0x88b   : > { %1837 = vmatpush.msra.mxu2 %v1783_v11  ;;  %p2277_p9 = scmp.ne.s32.totalorder %s3840_s21, 1 }
 0x88c   : > { %v1660_v5 = vmul.f32 %v2494_v61, %v1659_v3 }
 0x88d   : > { %1838 = vmatpush.msra.mxu2 %v1782_v12 }
 0x88e   : > { %v1664_v7 = vsel %vm1663_vm10, %v2494_v61, %v1660_v5  ;;  %v2456_v5 = vld [vmem:[%s880_s22] ss:$0 sm:$0xff] }
 0x88f   : > { %v1666_v8 = vmul.f32 %v1664_v7, %v3563_v59  ;;  %1839 = vmatpush.msra.mxu2 %v1781_v14  ;;  %v1767_v59 = vld [vmem:[%s3301_s19 + $0x10] sm:$0xff] }
 0x890   : > { %1814 = vmatpush.msra.mxu1 %v1767_v59 }
 0x891   : > { %v1671_v43 = vmul.f32 %v2452_v49, %v1666_v8 }
 0x892   : > { %1815 = vmatpush.msra.mxu1 %v1766_v15 }
 0x893   : > { %v1676_v9 = vadd.f32 %v2453_v51, %v1671_v43 }
 0x894   : > { %1816 = vmatpush.msra.mxu1 %v1765_v16 }
 0x895   : > { %1734 = vmatmul.f32.gmra.mxu3 %v1676_v9  ;;  %1757 = vmatmul.f32.gmra.mxu0 %v1676_v9 }
 0x8ff   : > { %v1755_v19 = vpop.f32.mrf.mxu0 }
 0x900   : > { %v1756_v20 = vadd.f32 %v1755_v19, %v1712_v18 }
 0x902   : > { %v1762_v22 = vmax.f32 %v1756_v20, 0.0 }
 0x904   : > { %1840 = vmatmul.f32.vlgmr.msra.gmra.mxu2 %v1762_v22 }
 0x905   : > { %v1732_v25 = vpop.f32.mrf.mxu3 }
 0x906   : > { %v1733_v26 = vadd.f32 %v1732_v25, %v1711_v24 }
 0x908   : > { %v1761_v27 = vmax.f32 %v1733_v26, 0.0 }
 0x90a   : > { %1817 = vmatmul.f32.vlgmr.msra.gmra.mxu1 %v1761_v27 }
 0x912   : > { %v1758_v28 = vpop.f32.mrf.mxu0 }
 0x913   : > { %v1759_v29 = vadd.f32 %v1758_v28, %v1712_v18 }
 0x915   : > { %v1764_v30 = vmax.f32 %v1759_v29, 0.0 }
 0x917   : > { %1843 = vmatmul.f32.gmra.mxu2 %v1764_v30 }
 0x918   : > { %v1735_v31 = vpop.f32.mrf.mxu3 }
 0x919   : > { %v1736_v38 = vadd.f32 %v1735_v31, %v1711_v24 }
 0x91b   : > { %v1763_v32 = vmax.f32 %v1736_v38, 0.0 }
 0x91d   : > { %1820 = vmatmul.f32.gmra.mxu1 %v1763_v32 }
 0x987   : > { %v1818_v36 = vpop.f32.mrf.mxu1  ;;  %v1841_v37 = vpop.f32.mrf.mxu2 }
 0x988   : > { %v1819_v57 = vadd.f32 %v2454_v33, %v1818_v36 }
 0x98a   : > { %v1842_v39 = vadd.f32 %v1841_v37, %v1819_v57 }
 0x98c   : > { %v1847_v40 = vadd.f32 %v1842_v39, %v3617_v56 }
 0x98e   : > { %1851 = vadd.xlane.f32.xlu1 %v1847_v40 }
 0x99a   : > { %v1821_v49 = vpop.f32.mrf.mxu1  ;;  %v1844_v44 = vpop.f32.mrf.mxu2 }
 0x99b   : > { %v1822_v42 = vadd.f32 %v2454_v33, %v1821_v49 }
 0x99d   : > { %v1845_v45 = vadd.f32 %v1844_v44, %v1822_v42 }
 0x99f   : > { %v1848_v47 = vadd.f32 %v1845_v45, %v1676_v9 }
 0x9a1   : > { %1853 = vadd.xlane.f32.xlu0 %v1848_v47 }
 0xa01   : > { %v1852_v50 = vpop.xlane.xlu1 %1851 }
 0xa02   : > { %v1855_v51 = vmul.f32 %v1852_v50, %v3555_v35 }
 0xa04   : > { %v1857_v52 = vsub.f32 %v1847_v40, %v1855_v51 }
 0xa06   : > { %v1859_v34 = vmul.f32 %v1857_v52, %v1857_v52 }
 0xa08   : > { %1861 = vadd.xlane.f32.xlu2 %v1859_v34 }
 0xa14   : > { %v1854_v53 = vpop.xlane.xlu0 %1853 }
 0xa15   : > { %v1856_v54 = vmul.f32 %v1854_v53, %v3555_v35 }
 0xa17   : > { %v1858_v55 = vsub.f32 %v1848_v47, %v1856_v54 }
 0xa19   : > { %v1860_v58 = vmul.f32 %v1858_v55, %v1858_v55 }
 0xa1b   : > { %1863 = vadd.xlane.f32.xlu1 %v1860_v58 }
 0xa7b   : > { %v1862_v56 = vpop.xlane.xlu2 %1861 }
 0xa7c   : > { %v1865_v41 = vmul.f32 %v1862_v56, %v3555_v35 }
 0xa7e   : > { %v1867_v60 = vadd.f32 1e-05, %v1865_v41 }
 0xa80   : > { %2495 = vrsqrt.f32 %v1867_v60  ;;  %vm1875_vm12 = vweird.f32 %v1867_v60 }
 0xa86   : > { %v2496_v61 = vpop.eup %2495 }
 0xa87   : > { %v1870_v21 = vmul.f32 %v2496_v61, %v1867_v60  ;;  %vm1876_vm11 = vweird.f32 %v2496_v61 }
 0xa88   : > { %vm1877_vm13 = vmor %vm1875_vm12, %vm1876_vm11 }
 0xa89   : > { %v1871_v23 = vmul.f32 %v2496_v61, %v1870_v21 }
 0xa8b   : > { %v1872_v62 = vmul.f32 0.5, %v1871_v23 }
 0xa8d   : > { %v1873_v46 = vsub.f32 1.5, %v1872_v62 }
 0xa8e   : > { %v1864_v63 = vpop.xlane.xlu1 %1863 }
 0xa8f   : > { %v1874_v0 = vmul.f32 %v2496_v61, %v1873_v46  ;;  %v1866_v1 = vmul.f32 %v1864_v63, %v3555_v35 }
 0xa91   : > { %v1878_v3 = vsel %vm1877_vm13, %v2496_v61, %v1874_v0  ;;  %v1868_v4 = vadd.f32 1e-05, %v1866_v1 }
 0xa92   : > { %v1889_v6 = vmul.f32 %v1878_v3, %v1857_v52 }
 0xa93   : > { %2497 = vrsqrt.f32 %v1868_v4  ;;  %vm1885_vm15 = vweird.f32 %v1868_v4 }
 0xa94   : > { %v1894_v7 = vmul.f32 %v2455_v2, %v1889_v6 }
 0xa96   : > { %v1899_v8 = vadd.f32 %v2456_v5, %v1894_v7 }
 0xa98   : > { %1901 = vst [vmem:[#allocation2] sm:$0xff] %v1899_v8 }
 0xa99   : > { %v2498_v43 = vpop.eup %2497 }
 0xa9a   : > { %v1880_v9 = vmul.f32 %v2498_v43, %v1868_v4  ;;  %vm1886_vm14 = vweird.f32 %v2498_v43 }
 0xa9b   : > { %vm1887_vm0 = vmor %vm1885_vm15, %vm1886_vm14 }
 0xa9c   : > { %v1881_v10 = vmul.f32 %v2498_v43, %v1880_v9 }
 0xa9e   : > { %v1882_v11 = vmul.f32 0.5, %v1881_v10 }
 0xaa0   : > { %v1883_v35 = vsub.f32 1.5, %v1882_v11 }
 0xaa2   : > { %v1884_v48 = vmul.f32 %v2498_v43, %v1883_v35 }
 0xaa4   : > { %v1888_v12 = vsel %vm1887_vm0, %v2498_v43, %v1884_v48 }
 0xaa5   : > { %v1890_v13 = vmul.f32 %v1888_v12, %v1858_v55 }
 0xaa7   : > { %v1895_v14 = vmul.f32 %v2455_v2, %v1890_v13  ;;  %1906 = sbr.rel (%p2277_p9) target bundleno = 2737 (0xab1), region = 120 }
 0xaa9   : > { %v1900_v59 = vadd.f32 %v2456_v5, %v1895_v14 }
 0xaab   : > { %1902 = vst [vmem:[#allocation2 + $0x8] sm:$0xff] %v1900_v59 }
 0xaac   : > { %v1907_v15 = vld [vmem:[%s3260_s11] sm:$0xff]  ;;  %v1908_v16 = vld [vmem:[%s3260_s11 + $0x8] sm:$0xff] }
 0xaad   : > { %v1909_v17 = vadd.f32 %v1907_v15, %v1899_v8  ;;  %v1910_v18 = vadd.f32 %v1908_v16, %v1900_v59 }
 0xaaf   : > { %1911 = vst [vmem:[%s3337_s29] sm:$0xff] %v1909_v17 }
 0xab0   : > { %1912 = vst [vmem:[%s3337_s29 + $0x8] sm:$0xff] %v1910_v18 }
 0xab1 PF: > { %s3841_s22 = sld [smem:[#allocation32_spill]]  ;;  %s1926_s23 = sshll.u32 %s3337_s29, 4  ;;  %s1927_s23 = int_to_ptr.vmem [resolvable:$true] %s1926_s23 }
 0xab2   : > { %s3843_s18 = sld [smem:[#allocation60_spill]]  ;;  %s1914_s2 = scalar_lea.sflag [#allocation5], %s3254_s1 }
 0xab7   : > { %s2287_s20 = sshll.u32 %s3841_s22, 4 }
 0xab8   : > { %s3844_s9 = smov %s3843_s18  ;;  %s1925_s15 = scalar_lea.hbm %s3843_s18, %s2287_s20 }
 0xab9   : > { %s1928_s17 = sshll.u32 %s1925_s15, 4  ;;  %s2789_s16 = scalar_lea.hbm %s3844_s9, 32  ;;  %s1929_s17 = int_to_ptr.hbm [resolvable:$true] %s1928_s17 }
 0xaba   : > { %s2783_s11 = sshra.s32 %s1929_s17, 4  ;;  %s2784_s11 = int_to_ptr.hbm [resolvable:$true] %s2783_s11 }
 0xabb   : > { %s2785_s4 = scalar_lea.hbm %s2784_s11, 16  ;;  %p2790_p7 = scmp.lt.s32.totalorder %s2784_s11, %s3844_s9 }
 0xabc   : > { %p2786_p13 = scmp.ne.s32.totalorder %s2784_s11, %s2785_s4  ;;  %p2791_p8 = scmp.lt.s32.totalorder %s2789_s16, %s2785_s4 }
 0xabe   : > { %p2787_p1 = pnand %p2786_p13, %p3093_p10  ;;  %p2792_p12 = por %p2791_p8, %p2790_p7 }
 0xac0   : > { %p2788_p5 = pneg %p2787_p1 }
 0xac2   : > { %p2793_p3 = pnand %p2792_p12, %p2788_p5 }
 0xac4   : > { %2796 = shalt.err (!%p2793_p3)
}
 0xac5   : > { %s2924_s1 = smov 128   ;;  %s2925_s29 = smov 8  }
 0xac6   : > { %2312 = dma.vmem_to_hbm [thread:$0]  (%p3093_p10), %s1927_s23, 256, %s1929_s17, %s1914_s2, %s2924_s1, %s2924_s1, %s2925_s29  }
 0xac7 PF: > { %s3845_s7 = sld [smem:[#allocation35_spill]] }
 0xac8   : > { %s3846_s6 = sld [smem:[#allocation28_spill]] }
 0xacd   : > { %p2347_p4 = scmp.ge.s32.totalorder %s3845_s7, 2 }
 0xace   : > { %s1943_s27 = sand.u32 1, %s3846_s6  }
 0xacf   : > { %p2343_p0 = pnand %p2347_p4, %p3099_p11  ;;  %s1944_s10 = scalar_lea.sflag [#allocation5], %s1943_s27 }
 0xad1   : > { %p2344_p2 = pneg %p2343_p0 }
 0xad3   : > { %2866 = dma.done.wait (%p2344_p2), %s1944_s10, 256  }
 0xad4   : > { %2868 = vsyncadd (%p2344_p2), %s1944_s10, 4294967040  ;;  %s42_s23 = sadd.s32 1, %s3845_s7   ;;  %s3848_s29 = sld [smem:[#allocation26_spill]] }
 0xad5   : > { %p39_p6 = scmp.ge.s32.totalorder %s42_s23, 6   ;;  %s3849_s30 = sld [smem:[#allocation27_spill]] }
 0xad6   : > { %s3850_s15 = sld [smem:[#allocation45_spill]] }
 0xad7   : > { %s3851_s16 = sld [smem:[#allocation29_spill]] }
 0xad8   : > { %s3852_s17 = sld [smem:[#allocation30_spill]] }
 0xad9   : > { %s3853_s18 = sld [smem:[#allocation41_spill]]  ;;  %41 = sbr.rel (!%p39_p6) target bundleno = 33 (0x21), region = 240 }
 0xada   : > { %s3854_s19 = sld [smem:[#allocation33_spill]] }
 0xadb   : > { %s3855_s20 = sld [smem:[#allocation34_spill]] }
 0xadc   : > { %s3856_s21 = sld [smem:[#allocation43_spill]] }
 0xadd   : > { %s3857_s22 = sld [smem:[#allocation37_spill]] }
 0xade   :  { %1950 = vsyncpa [#allocation4], 1 }
 0xadf   :  { %1952 = vsyncpa [#allocation4 + $0x1], 1 }
 0xae0   :  { %1953 = vsyncpa [#allocation7], 1 }
 0xae1   :  { %1955 = vsyncpa [#allocation7 + $0x1], 1 }
 0xae2   :  { %1956 = vsyncpa [#allocation10], 1 }
 0xae3   :  { %1958 = vsyncpa [#allocation10 + $0x1], 1 }
 0xae4   :  { %1959 = vsyncpa [#allocation13], 1 }
 0xae5   :  { %1961 = vsyncpa [#allocation13 + $0x1], 1 }
 0xae6   :  { %1962 = vsyncpa [#allocation16], 1 }
 0xae7   :  { %1964 = vsyncpa [#allocation16 + $0x1], 1 }
 0xae8   :  { %1965 = vsyncpa [#allocation5], 1 }
 0xae9   :  { %1967 = vsyncpa [#allocation5 + $0x1], 1 }

</bundles_post_ra>
